<compile_context>
chip_gen: v5e
topology: v5e:2x2
jax: 0.10.0
libtpu: 0.0.40
codegen_flags: <defaults>
</compile_context>

<pallas_src>
import functools

import jax
import jax.numpy as jnp
from jax import lax
from jax.experimental import pallas as pl
from jax.experimental.pallas import tpu as pltpu

LEAK = 0.2  # nn.LeakyReLU(0.2)


# ----------------------------- Pallas kernels ------------------------------ #
def _conv_layer_kernel(w_ref, b_ref, p_ref, o_ref):
    """out = leaky_relu(W @ patches + b); lane dim = M tile (lane dense).

    w_ref: (Cout, K)       bf16
    b_ref: (Cout, 1)       f32
    p_ref: (K, TILE_M)     bf16
    o_ref: (Cout, TILE_M)  bf16
    """
    y = jnp.dot(w_ref[...], p_ref[...], preferred_element_type=jnp.float32)
    y = y + b_ref[...]
    y = jnp.where(y > 0, y, LEAK * y)
    o_ref[...] = y.astype(o_ref.dtype)


def _tail_kernel(w3_ref, p3_ref, w4t_ref, sel_ref, b4_ref, o_ref):
    """Fused: block-3 conv + LeakyReLU, then the final 4x4/s2/p0 conv + Sigmoid.

    The final conv's receptive field is the entire 4x4 map, so per batch element
    it is a full dot product:   logit[n] = sum_{c,t} act[c, n*S + t] * w4[c, t] + b4
    implemented with only matmul / elementwise / sublane-reduce ops:
        act    = leaky_relu(W3 @ P3)                  (C3, N*S)
        prod   = act * W4_tiled                       (C3, N*S)
        colsum = sum_c prod                           (1,  N*S)
        logits = colsum @ Sel + b4                    (1,  N)
    """
    act = jnp.dot(w3_ref[...], p3_ref[...], preferred_element_type=jnp.float32)
    act = jnp.where(act > 0, act, LEAK * act)
    prod = act * w4t_ref[...].astype(jnp.float32)
    colsum = jnp.sum(prod, axis=0, keepdims=True)
    logits = jnp.dot(colsum, sel_ref[...],
                     preferred_element_type=jnp.float32) + b4_ref[...]
    o_ref[...] = 1.0 / (1.0 + jnp.exp(-logits))


# --------------------------- pallas_call wrappers --------------------------- #
def _conv_layer(w_mat, bias, patches, *, max_tile_m=512):
    """Lane-dense conv-as-matmul with an M-tiled parallel grid."""
    cout, k = w_mat.shape
    k2, m = patches.shape
    assert k == k2
    tile_m = next((t for t in (max_tile_m, 256, 128) if m % t == 0), m)
    return pl.pallas_call(
        _conv_layer_kernel,
        out_shape=jax.ShapeDtypeStruct((cout, m), jnp.bfloat16),
        grid=(m // tile_m,),
        in_specs=[
            pl.BlockSpec((cout, k), lambda i: (0, 0)),
            pl.BlockSpec((cout, 1), lambda i: (0, 0)),
            pl.BlockSpec((k, tile_m), lambda i: (0, i)),
        ],
        out_specs=pl.BlockSpec((cout, tile_m), lambda i: (0, i)),
        compiler_params=pltpu.CompilerParams(
            dimension_semantics=("parallel",)),
    )(w_mat, bias, patches)


def _tail(w3_mat, p3, w4_mat, b4, *, batch, spatial):
    """Fused last two layers. All operands are tiny -> single full-block call."""
    c3, k3 = w3_mat.shape
    m = batch * spatial
    w4t = jnp.tile(w4_mat, (1, batch))                         # (C3, N*S) bf16
    sel = (jnp.arange(m)[:, None] // spatial ==
           jnp.arange(batch)[None, :]).astype(jnp.float32)     # (N*S, N)
    return pl.pallas_call(
        _tail_kernel,
        out_shape=jax.ShapeDtypeStruct((1, batch), jnp.float32),
        in_specs=[
            pl.BlockSpec((c3, k3), lambda: (0, 0)),
            pl.BlockSpec((k3, m), lambda: (0, 0)),
            pl.BlockSpec((c3, m), lambda: (0, 0)),
            pl.BlockSpec((m, batch), lambda: (0, 0)),
            pl.BlockSpec((1, 1), lambda: (0, 0)),
        ],
        out_specs=pl.BlockSpec((1, batch), lambda: (0, 0)),
    )(w3_mat, p3, w4t, sel, b4)


# ------------------------------ JAX glue ------------------------------------ #
def _im2col_cm(x_cnhw, ksize, stride, pad):
    """im2col for channel-major activations.

    x: (C, N, H, W) -> patches (C*k*k, N*OH*OW) with row order (c, ki, kj),
    matching a PyTorch weight flattened as (Cout, Cin*KH*KW).
    """
    c, n, h, w = x_cnhw.shape
    xp = jnp.pad(x_cnhw, ((0, 0), (0, 0), (pad, pad), (pad, pad)))
    oh = (h + 2 * pad - ksize) // stride + 1
    ow = (w + 2 * pad - ksize) // stride + 1
    taps = []
    for ki in range(ksize):
        for kj in range(ksize):
            taps.append(xp[:, :, ki:ki + stride * oh:stride,
                           kj:kj + stride * ow:stride])
    pat = jnp.stack(taps, axis=1).reshape(c * ksize * ksize, n * oh * ow)
    return pat, oh, ow


# --------------------------- Parameters ------------------------------------- #
def init_discriminator_params(key, channels_img, features_d):
    """PyTorch-layout (Cout, Cin, KH, KW) params, shapes matching the nn.Module."""
    ks = jax.random.split(key, 8)
    fd = features_d
    p = {}
    p["w0"] = jax.random.normal(ks[0], (fd, channels_img, 4, 4), jnp.float32) * 0.05
    p["b0"] = jax.random.normal(ks[1], (fd,), jnp.float32) * 0.01
    p["w1"] = jax.random.normal(ks[2], (fd * 2, fd, 4, 4), jnp.float32) * 0.05
    p["w2"] = jax.random.normal(ks[3], (fd * 4, fd * 2, 4, 4), jnp.float32) * 0.05
    p["w3"] = jax.random.normal(ks[4], (fd * 8, fd * 4, 4, 4), jnp.float32) * 0.05
    p["w4"] = jax.random.normal(ks[5], (1, fd * 8, 4, 4), jnp.float32) * 0.05
    p["b4"] = jax.random.normal(ks[6], (1,), jnp.float32) * 0.01
    return p


def pack_discriminator_params(params):
    """One-time re-layout into kernel-ready matrices (hoisted out of forward)."""
    def mat(w):  # (Cout, Cin, KH, KW) -> (Cout, Cin*KH*KW) bf16, rows (cin,ki,kj)
        return w.reshape(w.shape[0], -1).astype(jnp.bfloat16)

    zb = lambda n: jnp.zeros((n, 1), jnp.float32)
    return {
        "w0": mat(params["w0"]),
        "b0": params["b0"].reshape(-1, 1).astype(jnp.float32),
        "w1": mat(params["w1"]), "b1": zb(params["w1"].shape[0]),
        "w2": mat(params["w2"]), "b2": zb(params["w2"].shape[0]),
        "w3": mat(params["w3"]),
        "w4": params["w4"][0].reshape(params["w4"].shape[1], -1).astype(jnp.bfloat16),
        "b4": params["b4"].reshape(1, 1).astype(jnp.float32),
    }


# ----------------------------- Forward -------------------------------------- #
def discriminator_forward(packed, x_nchw):
    """Discriminator forward; activations stay channel-major (C, N, H, W)."""
    n = x_nchw.shape[0]
    x = jnp.transpose(x_nchw, (1, 0, 2, 3)).astype(jnp.bfloat16)  # single transpose

    # Conv(C_img, fd, 4, 2, 1) + LeakyReLU
    p, oh, ow = _im2col_cm(x, 4, 2, 1)
    h = _conv_layer(packed["w0"], packed["b0"], p)
    h = h.reshape(packed["w0"].shape[0], n, oh, ow)

    # _block(fd, 2fd) and _block(2fd, 4fd): Conv(bias=False) + LeakyReLU
    for wk, bk in (("w1", "b1"), ("w2", "b2")):
        p, oh, ow = _im2col_cm(h, 4, 2, 1)
        h = _conv_layer(packed[wk], packed[bk], p)
        h = h.reshape(packed[wk].shape[0], n, oh, ow)

    # _block(4fd, 8fd) fused with Conv(8fd, 1, 4, 2, 0) + Sigmoid
    p3, oh, ow = _im2col_cm(h, 4, 2, 1)
    spatial = oh * ow
    assert spatial == packed["w4"].shape[1], (
        "final conv must cover the whole map (DCGAN 64x64 input assumed)")
    out = _tail(packed["w3"], p3, packed["w4"], packed["b4"],
                batch=n, spatial=spatial)            # (1, N) f32
    return out.reshape(n, 1, 1, 1)


# ----------------------------- Reference ------------------------------------ #
def _ref_forward(params, x):
    def conv(x, w, b, stride, pad):
        y = lax.conv_general_dilated(
            x, w, (stride, stride), [(pad, pad), (pad, pad)],
            dimension_numbers=("NCHW", "OIHW", "NCHW"))
        return y + b.reshape(1, -1, 1, 1)

    lrelu = lambda y: jnp.where(y > 0, y, LEAK * y)
    z = jnp.zeros
    h = lrelu(conv(x, params["w0"], params["b0"], 2, 1))
    h = lrelu(conv(h, params["w1"], z((params["w1"].shape[0],)), 2, 1))
    h = lrelu(conv(h, params["w2"], z((params["w2"].shape[0],)), 2, 1))
    h = lrelu(conv(h, params["w3"], z((params["w3"].shape[0],)), 2, 1))
    h = conv(h, params["w4"], params["b4"], 2, 0)
    return 1.0 / (1.0 + jnp.exp(-h))


# ------------------------------- Main ---------------------------------------- #
if __name__ == "__main__":
    key = jax.random.PRNGKey(0)
    k_param, k_x = jax.random.split(key)

    # DCGAN-consistent config: 64x64 images (required for the final 4x4 stride-2
    # pad-0 conv to produce a 1x1 output), batch=2, features_d=8.
    batch, channels_img, features_d, img = 2, 3, 8, 64
    params = init_discriminator_params(k_param, channels_img, features_d)
    packed = pack_discriminator_params(params)
    x = jax.random.normal(k_x, (batch, channels_img, img, img), jnp.float32)

    fwd = jax.jit(discriminator_forward)
    out = jax.block_until_ready(fwd(packed, x))
    assert out.shape == (batch, 1, 1, 1), out.shape

    ref = jax.block_until_ready(_ref_forward(params, x))
    # bf16 operands / f32 accumulation vs. f32 reference; outputs are
    # post-sigmoid in (0, 1), so a 2e-2 tolerance is comfortably loose.
    assert jnp.allclose(out, ref, rtol=2e-2, atol=2e-2), (out, ref)

    print("KERNEL_OK")
</pallas_src>

<mosaic_0001>
module attributes {stable_mosaic.version = 11 : i64} {
  func.func @_conv_layer_kernel(%arg0: i32, %arg1: memref<8x48xbf16, #tpu.memory_space<vmem>>, %arg2: memref<8x1xf32, #tpu.memory_space<vmem>>, %arg3: memref<48x512xbf16, #tpu.memory_space<vmem>>, %arg4: memref<8x512xbf16, #tpu.memory_space<vmem>>) attributes {dimension_semantics = [#tpu.dimension_semantics<parallel>], iteration_bounds = array<i64: 4>, scalar_prefetch = 0 : i64, scratch_operands = 0 : i64, tpu.core_type = #tpu.core_type<tc>, window_params = [{pipeline_mode = #tpu.pipeline_mode<synchronous>, transform_indices = @transform_0, window_bounds = array<i64: 8, 48>}, {pipeline_mode = #tpu.pipeline_mode<synchronous>, transform_indices = @transform_1, window_bounds = array<i64: 8, 1>}, {transform_indices = @transform_2, window_bounds = array<i64: 48, 512>}, {transform_indices = @transform_3, window_bounds = array<i64: 8, 512>}]} {
    %c0 = arith.constant 0 : index
    %c0_0 = arith.constant 0 : index
    %0 = vector.load %arg1[%c0, %c0_0] : memref<8x48xbf16, #tpu.memory_space<vmem>>, vector<8x48xbf16>
    %c0_1 = arith.constant 0 : index
    %c0_2 = arith.constant 0 : index
    %1 = vector.load %arg3[%c0_1, %c0_2] : memref<48x512xbf16, #tpu.memory_space<vmem>>, vector<48x512xbf16>
    %cst = arith.constant dense<0.000000e+00> : vector<8x512xf32>
    %2 = tpu.matmul %0, %1, %cst {dimension_numbers = #tpu.dot_dimension_numbers<[1], [0], [0], [1], [0, 0, 1, 1], [], []>} : vector<8x48xbf16>, vector<48x512xbf16>, vector<8x512xf32> -> vector<8x512xf32>
    %c0_3 = arith.constant 0 : index
    %c0_4 = arith.constant 0 : index
    %3 = vector.load %arg2[%c0_3, %c0_4] : memref<8x1xf32, #tpu.memory_space<vmem>>, vector<8x1xf32>
    %4 = vector.broadcast %3 : vector<8x1xf32> to vector<8x512xf32>
    %5 = arith.addf %2, %4 : vector<8x512xf32>
    %cst_5 = arith.constant 0.000000e+00 : f32
    %6 = vector.broadcast %cst_5 : f32 to vector<8x512xf32>
    %7 = arith.cmpf ogt, %5, %6 : vector<8x512xf32>
    %cst_6 = arith.constant 2.000000e-01 : f32
    %8 = vector.broadcast %cst_6 : f32 to vector<8x512xf32>
    %9 = arith.mulf %8, %5 : vector<8x512xf32>
    %10 = arith.select %7, %5, %9 : vector<8x512xi1>, vector<8x512xf32>
    %11 = arith.truncf %10 : vector<8x512xf32> to vector<8x512xbf16>
    %c0_7 = arith.constant 0 : index
    %c0_8 = arith.constant 0 : index
    %12 = vector.load %arg4[%c0_7, %c0_8] : memref<8x512xbf16, #tpu.memory_space<vmem>>, vector<8x512xbf16>
    tpu.vector_store %arg4[%c0_7, %c0_8], %11 {strides = array<i32>} : memref<8x512xbf16, #tpu.memory_space<vmem>>, vector<8x512xbf16>,
    return
  }
  func.func @transform_0(%arg0: i32) -> (i32, i32) {
    %c0_i32 = arith.constant 0 : i32
    %c0_i32_0 = arith.constant 0 : i32
    %c0_i32_1 = arith.constant 0 : i32
    return %c0_i32, %c0_i32_0 : i32, i32
  }
  func.func @transform_1(%arg0: i32) -> (i32, i32) {
    %c0_i32 = arith.constant 0 : i32
    %c0_i32_0 = arith.constant 0 : i32
    %c0_i32_1 = arith.constant 0 : i32
    return %c0_i32, %c0_i32_0 : i32, i32
  }
  func.func @transform_2(%arg0: i32) -> (i32, i32) {
    %c0_i32 = arith.constant 0 : i32
    %c0_i32_0 = arith.constant 0 : i32
    return %c0_i32, %arg0 : i32, i32
  }
  func.func @transform_3(%arg0: i32) -> (i32, i32) {
    %c0_i32 = arith.constant 0 : i32
    %c0_i32_0 = arith.constant 0 : i32
    return %c0_i32, %arg0 : i32, i32
  }
}

module attributes {stable_mosaic.version = 11 : i64} {
  func.func @_conv_layer_kernel(%arg0: i32, %arg1: memref<16x128xbf16, #tpu.memory_space<vmem>>, %arg2: memref<16x1xf32, #tpu.memory_space<vmem>>, %arg3: memref<128x512xbf16, #tpu.memory_space<vmem>>, %arg4: memref<16x512xbf16, #tpu.memory_space<vmem>>) attributes {dimension_semantics = [#tpu.dimension_semantics<parallel>], iteration_bounds = array<i64: 1>, scalar_prefetch = 0 : i64, scratch_operands = 0 : i64, tpu.core_type = #tpu.core_type<tc>, window_params = [{pipeline_mode = #tpu.pipeline_mode<synchronous>, transform_indices = @transform_0, window_bounds = array<i64: 16, 128>}, {pipeline_mode = #tpu.pipeline_mode<synchronous>, transform_indices = @transform_1, window_bounds = array<i64: 16, 1>}, {transform_indices = @transform_2, window_bounds = array<i64: 128, 512>}, {transform_indices = @transform_3, window_bounds = array<i64: 16, 512>}]} {
    %c0 = arith.constant 0 : index
    %c0_0 = arith.constant 0 : index
    %0 = vector.load %arg1[%c0, %c0_0] : memref<16x128xbf16, #tpu.memory_space<vmem>>, vector<16x128xbf16>
    %c0_1 = arith.constant 0 : index
    %c0_2 = arith.constant 0 : index
    %1 = vector.load %arg3[%c0_1, %c0_2] : memref<128x512xbf16, #tpu.memory_space<vmem>>, vector<128x512xbf16>
    %cst = arith.constant dense<0.000000e+00> : vector<16x512xf32>
    %2 = tpu.matmul %0, %1, %cst {dimension_numbers = #tpu.dot_dimension_numbers<[1], [0], [0], [1], [0, 0, 1, 1], [], []>} : vector<16x128xbf16>, vector<128x512xbf16>, vector<16x512xf32> -> vector<16x512xf32>
    %c0_3 = arith.constant 0 : index
    %c0_4 = arith.constant 0 : index
    %3 = vector.load %arg2[%c0_3, %c0_4] : memref<16x1xf32, #tpu.memory_space<vmem>>, vector<16x1xf32>
    %4 = vector.broadcast %3 : vector<16x1xf32> to vector<16x512xf32>
    %5 = arith.addf %2, %4 : vector<16x512xf32>
    %cst_5 = arith.constant 0.000000e+00 : f32
    %6 = vector.broadcast %cst_5 : f32 to vector<16x512xf32>
    %7 = arith.cmpf ogt, %5, %6 : vector<16x512xf32>
    %cst_6 = arith.constant 2.000000e-01 : f32
    %8 = vector.broadcast %cst_6 : f32 to vector<16x512xf32>
    %9 = arith.mulf %8, %5 : vector<16x512xf32>
    %10 = arith.select %7, %5, %9 : vector<16x512xi1>, vector<16x512xf32>
    %11 = arith.truncf %10 : vector<16x512xf32> to vector<16x512xbf16>
    %c0_7 = arith.constant 0 : index
    %c0_8 = arith.constant 0 : index
    %12 = vector.load %arg4[%c0_7, %c0_8] : memref<16x512xbf16, #tpu.memory_space<vmem>>, vector<16x512xbf16>
    tpu.vector_store %arg4[%c0_7, %c0_8], %11 {strides = array<i32>} : memref<16x512xbf16, #tpu.memory_space<vmem>>, vector<16x512xbf16>,
    return
  }
  func.func @transform_0(%arg0: i32) -> (i32, i32) {
    %c0_i32 = arith.constant 0 : i32
    %c0_i32_0 = arith.constant 0 : i32
    %c0_i32_1 = arith.constant 0 : i32
    return %c0_i32, %c0_i32_0 : i32, i32
  }
  func.func @transform_1(%arg0: i32) -> (i32, i32) {
    %c0_i32 = arith.constant 0 : i32
    %c0_i32_0 = arith.constant 0 : i32
    %c0_i32_1 = arith.constant 0 : i32
    return %c0_i32, %c0_i32_0 : i32, i32
  }
  func.func @transform_2(%arg0: i32) -> (i32, i32) {
    %c0_i32 = arith.constant 0 : i32
    %c0_i32_0 = arith.constant 0 : i32
    return %c0_i32, %arg0 : i32, i32
  }
  func.func @transform_3(%arg0: i32) -> (i32, i32) {
    %c0_i32 = arith.constant 0 : i32
    %c0_i32_0 = arith.constant 0 : i32
    return %c0_i32, %arg0 : i32, i32
  }
}

module attributes {stable_mosaic.version = 11 : i64} {
  func.func @_conv_layer_kernel(%arg0: i32, %arg1: memref<32x256xbf16, #tpu.memory_space<vmem>>, %arg2: memref<32x1xf32, #tpu.memory_space<vmem>>, %arg3: memref<256x128xbf16, #tpu.memory_space<vmem>>, %arg4: memref<32x128xbf16, #tpu.memory_space<vmem>>) attributes {dimension_semantics = [#tpu.dimension_semantics<parallel>], iteration_bounds = array<i64: 1>, scalar_prefetch = 0 : i64, scratch_operands = 0 : i64, tpu.core_type = #tpu.core_type<tc>, window_params = [{pipeline_mode = #tpu.pipeline_mode<synchronous>, transform_indices = @transform_0, window_bounds = array<i64: 32, 256>}, {pipeline_mode = #tpu.pipeline_mode<synchronous>, transform_indices = @transform_1, window_bounds = array<i64: 32, 1>}, {transform_indices = @transform_2, window_bounds = array<i64: 256, 128>}, {transform_indices = @transform_3, window_bounds = array<i64: 32, 128>}]} {
    %c0 = arith.constant 0 : index
    %c0_0 = arith.constant 0 : index
    %0 = vector.load %arg1[%c0, %c0_0] : memref<32x256xbf16, #tpu.memory_space<vmem>>, vector<32x256xbf16>
    %c0_1 = arith.constant 0 : index
    %c0_2 = arith.constant 0 : index
    %1 = vector.load %arg3[%c0_1, %c0_2] : memref<256x128xbf16, #tpu.memory_space<vmem>>, vector<256x128xbf16>
    %cst = arith.constant dense<0.000000e+00> : vector<32x128xf32>
    %2 = tpu.matmul %0, %1, %cst {dimension_numbers = #tpu.dot_dimension_numbers<[1], [0], [0], [1], [0, 0, 1, 1], [], []>} : vector<32x256xbf16>, vector<256x128xbf16>, vector<32x128xf32> -> vector<32x128xf32>
    %c0_3 = arith.constant 0 : index
    %c0_4 = arith.constant 0 : index
    %3 = vector.load %arg2[%c0_3, %c0_4] : memref<32x1xf32, #tpu.memory_space<vmem>>, vector<32x1xf32>
    %4 = vector.broadcast %3 : vector<32x1xf32> to vector<32x128xf32>
    %5 = arith.addf %2, %4 : vector<32x128xf32>
    %cst_5 = arith.constant 0.000000e+00 : f32
    %6 = vector.broadcast %cst_5 : f32 to vector<32x128xf32>
    %7 = arith.cmpf ogt, %5, %6 : vector<32x128xf32>
    %cst_6 = arith.constant 2.000000e-01 : f32
    %8 = vector.broadcast %cst_6 : f32 to vector<32x128xf32>
    %9 = arith.mulf %8, %5 : vector<32x128xf32>
    %10 = arith.select %7, %5, %9 : vector<32x128xi1>, vector<32x128xf32>
    %11 = arith.truncf %10 : vector<32x128xf32> to vector<32x128xbf16>
    %c0_7 = arith.constant 0 : index
    %c0_8 = arith.constant 0 : index
    %12 = vector.load %arg4[%c0_7, %c0_8] : memref<32x128xbf16, #tpu.memory_space<vmem>>, vector<32x128xbf16>
    tpu.vector_store %arg4[%c0_7, %c0_8], %11 {strides = array<i32>} : memref<32x128xbf16, #tpu.memory_space<vmem>>, vector<32x128xbf16>,
    return
  }
  func.func @transform_0(%arg0: i32) -> (i32, i32) {
    %c0_i32 = arith.constant 0 : i32
    %c0_i32_0 = arith.constant 0 : i32
    %c0_i32_1 = arith.constant 0 : i32
    return %c0_i32, %c0_i32_0 : i32, i32
  }
  func.func @transform_1(%arg0: i32) -> (i32, i32) {
    %c0_i32 = arith.constant 0 : i32
    %c0_i32_0 = arith.constant 0 : i32
    %c0_i32_1 = arith.constant 0 : i32
    return %c0_i32, %c0_i32_0 : i32, i32
  }
  func.func @transform_2(%arg0: i32) -> (i32, i32) {
    %c0_i32 = arith.constant 0 : i32
    %c0_i32_0 = arith.constant 0 : i32
    return %c0_i32, %arg0 : i32, i32
  }
  func.func @transform_3(%arg0: i32) -> (i32, i32) {
    %c0_i32 = arith.constant 0 : i32
    %c0_i32_0 = arith.constant 0 : i32
    return %c0_i32, %arg0 : i32, i32
  }
}

module attributes {stable_mosaic.version = 11 : i64} {
  func.func @_tail_kernel(%arg0: memref<64x512xbf16, #tpu.memory_space<vmem>>, %arg1: memref<512x32xbf16, #tpu.memory_space<vmem>>, %arg2: memref<64x32xbf16, #tpu.memory_space<vmem>>, %arg3: memref<32x2xf32, #tpu.memory_space<vmem>>, %arg4: memref<1x1xf32, #tpu.memory_space<vmem>>, %arg5: memref<1x2xf32, #tpu.memory_space<vmem>>) attributes {dimension_semantics = [], scalar_prefetch = 0 : i64, scratch_operands = 0 : i64, tpu.core_type = #tpu.core_type<tc>} {
    %c0 = arith.constant 0 : index
    %c0_0 = arith.constant 0 : index
    %0 = vector.load %arg0[%c0, %c0_0] : memref<64x512xbf16, #tpu.memory_space<vmem>>, vector<64x512xbf16>
    %c0_1 = arith.constant 0 : index
    %c0_2 = arith.constant 0 : index
    %1 = vector.load %arg1[%c0_1, %c0_2] : memref<512x32xbf16, #tpu.memory_space<vmem>>, vector<512x32xbf16>
    %cst = arith.constant dense<0.000000e+00> : vector<64x32xf32>
    %2 = tpu.matmul %0, %1, %cst {dimension_numbers = #tpu.dot_dimension_numbers<[1], [0], [0], [1], [0, 0, 1, 1], [], []>} : vector<64x512xbf16>, vector<512x32xbf16>, vector<64x32xf32> -> vector<64x32xf32>
    %cst_3 = arith.constant 0.000000e+00 : f32
    %3 = vector.broadcast %cst_3 : f32 to vector<64x32xf32>
    %4 = arith.cmpf ogt, %2, %3 : vector<64x32xf32>
    %cst_4 = arith.constant 2.000000e-01 : f32
    %5 = vector.broadcast %cst_4 : f32 to vector<64x32xf32>
    %6 = arith.mulf %5, %2 : vector<64x32xf32>
    %7 = arith.select %4, %2, %6 : vector<64x32xi1>, vector<64x32xf32>
    %c0_5 = arith.constant 0 : index
    %c0_6 = arith.constant 0 : index
    %8 = vector.load %arg2[%c0_5, %c0_6] : memref<64x32xbf16, #tpu.memory_space<vmem>>, vector<64x32xbf16>
    %9 = arith.extf %8 : vector<64x32xbf16> to vector<64x32xf32>
    %10 = arith.mulf %7, %9 : vector<64x32xf32>
    %cst_7 = arith.constant dense<0.000000e+00> : vector<32xf32>
    %11 = vector.multi_reduction <add>, %10, %cst_7 [0] : vector<64x32xf32> to vector<32xf32>
    %12 = vector.shape_cast %11 : vector<32xf32> to vector<1x32xf32>
    %c0_8 = arith.constant 0 : index
    %c0_9 = arith.constant 0 : index
    %13 = vector.load %arg3[%c0_8, %c0_9] : memref<32x2xf32, #tpu.memory_space<vmem>>, vector<32x2xf32>
    %cst_10 = arith.constant dense<0.000000e+00> : vector<1x2xf32>
    %14 = tpu.matmul %12, %13, %cst_10 {dimension_numbers = #tpu.dot_dimension_numbers<[1], [0], [0], [1], [0, 0, 1, 1], [], []>} : vector<1x32xf32>, vector<32x2xf32>, vector<1x2xf32> -> vector<1x2xf32>
    %c0_11 = arith.constant 0 : index
    %c0_12 = arith.constant 0 : index
    %15 = vector.load %arg4[%c0_11, %c0_12] : memref<1x1xf32, #tpu.memory_space<vmem>>, vector<1x1xf32>
    %16 = vector.broadcast %15 : vector<1x1xf32> to vector<1x2xf32>
    %17 = arith.addf %14, %16 : vector<1x2xf32>
    %cst_13 = arith.constant 0.000000e+00 : f32
    %18 = vector.broadcast %cst_13 : f32 to vector<1x2xf32>
    %19 = arith.subf %18, %17 : vector<1x2xf32>
    %20 = math.exp %19 : vector<1x2xf32>
    %cst_14 = arith.constant 1.000000e+00 : f32
    %21 = vector.broadcast %cst_14 : f32 to vector<1x2xf32>
    %22 = arith.addf %21, %20 : vector<1x2xf32>
    %cst_15 = arith.constant 1.000000e+00 : f32
    %23 = vector.broadcast %cst_15 : f32 to vector<1x2xf32>
    %24 = arith.divf %23, %22 : vector<1x2xf32>
    %c0_16 = arith.constant 0 : index
    %c0_17 = arith.constant 0 : index
    %25 = vector.load %arg5[%c0_16, %c0_17] : memref<1x2xf32, #tpu.memory_space<vmem>>, vector<1x2xf32>
    tpu.vector_store %arg5[%c0_16, %c0_17], %24 {strides = array<i32>} : memref<1x2xf32, #tpu.memory_space<vmem>>, vector<1x2xf32>,
    return
  }
}

</mosaic_0001>

<bundles_post_ra>
// kernel: discriminator_forward.4
= control target key start
LH: loop header
LB: loop body
LE: loop exit
PB: predicated region body
PF: predicated region fallthrough
CT: control target
= control target key end

     0   :  { %s578_s12 = smov 0   ;;  %s580_s13 = smov 0   ;;  %s662_s0 = inlined_call_operand.vmem [shape: bf16[8,48], index: 0, kind: input, shape index: {}]   ;;  %s663_s1 = inlined_call_operand.vmem [shape: f32[8,1], index: 1, kind: input, shape index: {}]   ;;  %s664_s2 = inlined_call_operand.vmem [shape: bf16[48,2048], index: 2, kind: input, shape index: {}]   ;;  %s665_s3 = inlined_call_operand.vmem [shape: bf16[8,2048], index: 3, kind: output, shape index: {}]  }
   0x1   :  { %s582_s14 = smov 0  }
   0x2 LB: > { %s429_s15 = sadd.s32 4294967295, %s555_s14   ;;  %s595_s16 = sadd.s32 1, %s555_s14   ;;  %s555_s14 = sphi %s582_s14, %s668_s14   ;;  %s551_s13 = sphi %s580_s13, %s667_s13   ;;  %s547_s12 = sphi %s578_s12, %s666_s12  }
   0x3   : > { %s59_s17 = ssub.s32 %s555_s14, %s595_s16  ;;  %s62_s18 = sadd.s32 1, %s551_s13 }
   0x4   : > { %p60_p0 = scmp.eq.s32.totalorder %s59_s17, 0  ;;  %p69_p1 = scmp.ne.s32.totalorder %s551_s13, %s547_s12 }
   0x5   : > { %p70_p2 = scmp.eq.s32.totalorder %s555_s14, 0  ;;  %p432_p4 = scmp.ge.s32.totalorder %s555_s14, 4 }
   0x6   : > { %s604_s19 = scalar_select %p60_p0, %s551_s13, %s62_s18  }
   0x7   : > { %p71_p3 = por %p70_p2, %p69_p1  ;;  %127 = sbr.rel (%p432_p4) target bundleno = 28 (0x1c), region = 24 }
   0xc   : > { %130 = sbr.rel (!%p71_p3) target bundleno = 28 (0x1c), region = 28  ;;  %s132_s20 = sand.u32 (%p71_p3), 1, %s551_s13  }
   0xd   : > { %s492_s21 = sshll.u32 (%p71_p3), %s555_s14, 4  ;;  %s505_s22 = smul.u32 (%p71_p3), 96, %s132_s20 }
   0xe   : > { %s137_s25 = scalar_lea.vmem (%p71_p3), %s664_s2, %s492_s21 }
   0xf   : > { %v150_v0 = vld [vmem:[%s137_s25] sm:$0xff] (%p71_p3)  ;;  %v152_v1 = vld [vmem:[%s137_s25 + $0x8] sm:$0xff] (%p71_p3)  ;;  %s134_s26 = scalar_lea.vmem (%p71_p3), [#allocation2], %s505_s22 }
  0x10   : > { %v154_v2 = vld [vmem:[%s137_s25 + $0x40] sm:$0xff] (%p71_p3)  ;;  %151 = vst [vmem:[%s134_s26] sm:$0xff] (%p71_p3), %v150_v0  ;;  %v156_v3 = vld [vmem:[%s137_s25 + $0x48] sm:$0xff] (%p71_p3) }
  0x11   : > { %153 = vst [vmem:[%s134_s26 + $0x8] sm:$0xff] %v152_v1  ;;  %v158_v4 = vld [vmem:[%s137_s25 + $0x80] sm:$0xff]  ;;  %v160_v5 = vld [vmem:[%s137_s25 + $0x88] sm:$0xff] }
  0x12   : > { %155 = vst [vmem:[%s134_s26 + $0x10] sm:$0xff] %v154_v2  ;;  %v162_v6 = vld [vmem:[%s137_s25 + $0xc0] sm:$0xff]  ;;  %v164_v7 = vld [vmem:[%s137_s25 + $0xc8] sm:$0xff] }
  0x13   : > { %157 = vst [vmem:[%s134_s26 + $0x18] sm:$0xff] %v156_v3  ;;  %v166_v8 = vld [vmem:[%s137_s25 + $0x100] sm:$0xff]  ;;  %v168_v9 = vld [vmem:[%s137_s25 + $0x108] sm:$0xff] }
  0x14   : > { %159 = vst [vmem:[%s134_s26 + $0x20] sm:$0xff] %v158_v4  ;;  %v170_v10 = vld [vmem:[%s137_s25 + $0x140] sm:$0xff]  ;;  %v172_v11 = vld [vmem:[%s137_s25 + $0x148] sm:$0xff] }
  0x15   : > { %161 = vst [vmem:[%s134_s26 + $0x28] sm:$0xff] %v160_v5 }
  0x16   : > { %163 = vst [vmem:[%s134_s26 + $0x30] sm:$0xff] %v162_v6 }
  0x17   : > { %165 = vst [vmem:[%s134_s26 + $0x38] sm:$0xff] %v164_v7 }
  0x18   : > { %167 = vst [vmem:[%s134_s26 + $0x40] sm:$0xff] %v166_v8 }
  0x19   : > { %169 = vst [vmem:[%s134_s26 + $0x48] sm:$0xff] %v168_v9 }
  0x1a   : > { %171 = vst [vmem:[%s134_s26 + $0x50] sm:$0xff] %v170_v10 }
  0x1b   : > { %173 = vst [vmem:[%s134_s26 + $0x58] sm:$0xff] %v172_v11 }
  0x1c PF: > { %p435_p5 = scmp.ge.s32.totalorder %s555_s14, 1  ;;  %p178_p6 = scmp.lt.s32.totalorder %s555_s14, 5 }
  0x1e   : > { %p179_p7 = pnand %p435_p5, %p178_p6 }
  0x1f   : > { %s185_s27 = sand.u32 (!%p179_p7), 1, %s547_s12   ;;  %s436_s7 = sshll.u32 (!%p179_p7), %s429_s15, 2 }
  0x20   : > { %182 = sbr.rel (%p179_p7) target bundleno = 193 (0xc1), region = 51  ;;  %p210_p8 = scmp.lt.s32.totalorder (!%p179_p7), %s436_s7, 15 }
  0x21   : > { %s506_s30 = smul.u32 (!%p179_p7), 96, %s185_s27 }
  0x23   : > { %s618_s4 = scalar_lea.vmem (!%p179_p7), [#allocation2], %s506_s30 }
  0x25   : > { %v229_v12 = vld [vmem:[%s663_s1] sm:$0xff]  ;;  %v557_v13 = vmov 0   ;;  %v503_v15 = vld [vmem:[%s618_s4 + $0x4c] sm:$0xf0]  ;;  %v474_v18 = vld [vmem:[%s618_s4 + $0x50] sm:$0xf0] }
  0x26   : > { %532 = vset.pattern.permute.xlu0 %v557_v13  ;;  %v472_v14 = vld [vmem:[%s618_s4 + $0x40] sm:$0xf]  ;;  %v501_v16 = vld [vmem:[%s618_s4 + $0x44] sm:$0xf]  ;;  %v480_v19 = vld [vmem:[%s618_s4 + $0x48] sm:$0xf] }
  0x27   : > { %232 = vperm.xlu0 %532, %v229_v12   ;;  %v473_v17 = vor.u32 %v503_v15, %v472_v14  ;;  %v504_v20 = vld [vmem:[%s618_s4 + $0x54] sm:$0xf0]  ;;  %v477_v21 = vor.u32 %v501_v16, %v474_v18  ;;  %v502_v23 = vld [vmem:[%s618_s4 + $0x4c] sm:$0xf]  ;;  %v482_v24 = vld [vmem:[%s618_s4 + $0x58] sm:$0xf0] }
  0x28   : > { %v481_v22 = vor.u32 %v504_v20, %v480_v19  ;;  %v456_v25 = vld [vmem:[%s618_s4 + $0x20] sm:$0xf]  ;;  %v485_v26 = vor.u32 %v502_v23, %v482_v24  ;;  %v499_v27 = vld [vmem:[%s618_s4 + $0x2c] sm:$0xf0]  ;;  %v497_v28 = vld [vmem:[%s618_s4 + $0x24] sm:$0xf] }
  0x29   : > { %304 = vmatpush.bf16.msra.mxu0 %v473_v17  ;;  %v458_v29 = vld [vmem:[%s618_s4 + $0x30] sm:$0xf0]  ;;  %317 = vmatpush.bf16.msra.mxu1 %v477_v21  ;;  %v457_v30 = vor.u32 %v499_v27, %v456_v25  ;;  %v464_v32 = vld [vmem:[%s618_s4 + $0x28] sm:$0xf]  ;;  %v500_v33 = vld [vmem:[%s618_s4 + $0x34] sm:$0xf0] }
  0x2a   : > { %330 = vmatpush.bf16.msra.mxu2 %v481_v22  ;;  %v461_v31 = vor.u32 %v497_v28, %v458_v29  ;;  %v498_v34 = vld [vmem:[%s618_s4 + $0x2c] sm:$0xf]  ;;  %343 = vmatpush.bf16.msra.mxu3 %v485_v26  ;;  %v465_v35 = vor.u32 %v500_v33, %v464_v32  ;;  %v466_v36 = vld [vmem:[%s618_s4 + $0x38] sm:$0xf0]  ;;  %v440_v37 = vld [vmem:[%s618_s4] sm:$0xf] }
  0x2b   : > { %v495_v38 = vld [vmem:[%s618_s4 + $0xc] sm:$0xf0]  ;;  %v469_v39 = vor.u32 %v498_v34, %v466_v36  ;;  %v493_v40 = vld [vmem:[%s618_s4 + $0x4] sm:$0xf]  ;;  %v442_v41 = vld [vmem:[%s618_s4 + $0x10] sm:$0xf0] }
  0x2c   : > { %v448_v42 = vld [vmem:[%s618_s4 + $0x8] sm:$0xf]  ;;  %v441_v43 = vor.u32 %v495_v38, %v440_v37  ;;  %v496_v44 = vld [vmem:[%s618_s4 + $0x14] sm:$0xf0]  ;;  %v494_v45 = vld [vmem:[%s618_s4 + $0xc] sm:$0xf]  ;;  %v445_v47 = vor.u32 %v493_v40, %v442_v41 }
  0x2d   : > { %305 = vmatpush.bf16.msra.mxu0 %v457_v30  ;;  %v450_v46 = vld [vmem:[%s618_s4 + $0x18] sm:$0xf0]  ;;  %318 = vmatpush.bf16.msra.mxu1 %v461_v31  ;;  %v449_v48 = vor.u32 %v496_v44, %v448_v42  ;;  %v216_v50 = vld [vmem:[%s662_s0] sm:$0xf]  ;;  %vm295_vm0 = vcmask 392192   ;;  %s670_s7 = smov (!%p210_p8, %s436_s7), 15 }
  0x2e   : > { %331 = vmatpush.bf16.msra.mxu2 %v465_v35  ;;  %344 = vmatpush.bf16.msra.mxu3 %v469_v39  ;;  %v453_v49 = vor.u32 %v494_v45, %v450_v46  ;;  %s437_s8 = sshll.u32 %s670_s7, 2 }
  0x2f   : > { %s213_s11 = scalar_lea.vmem %s665_s3, %s437_s8 }
  0x31   : > { %306 = vmatpush.bf16.msra.mxu0 %v441_v43  ;;  %319 = vmatpush.bf16.msra.mxu1 %v445_v47 }
  0x32   : > { %332 = vmatpush.bf16.msra.mxu2 %v449_v48  ;;  %345 = vmatpush.bf16.msra.mxu3 %v453_v49 }
  0x34   : > { %486 = vmatmul.msk.bf16.vlgmr.msra.gmra.mxu0 %vm295_vm0, %v216_v50  ;;  %487 = vmatmul.msk.bf16.vlgmr.msra.gmra.mxu1 %vm295_vm0, %v216_v50 }
  0x35   : > { %488 = vmatmul.msk.bf16.vlgmr.msra.gmra.mxu2 %vm295_vm0, %v216_v50  ;;  %489 = vmatmul.msk.bf16.vlgmr.msra.gmra.mxu3 %vm295_vm0, %v216_v50 }
  0x99   : > { %v233_v51 = vpop.permute.xlu0 %232 }
  0xb1   : > { %v308_v52 = vpop.f32.mrf.mxu0  ;;  %v321_v53 = vpop.f32.mrf.mxu1 }
  0xb2   : > { %v309_v54 = vadd.f32 %v308_v52, %v233_v51  ;;  %v322_v55 = vadd.f32 %v321_v53, %v233_v51 }
  0xb4   : > { %vm351_vm1 = vcmp.gt.f32.partialorder %v309_v54, 0.0  ;;  %v355_v56 = vmul.f32 0.2, %v309_v54  ;;  %vm352_vm2 = vcmp.gt.f32.partialorder %v322_v55, 0.0  ;;  %v356_v57 = vmul.f32 0.2, %v322_v55 }
  0xb6   : > { %v359_v58 = vsel %vm351_vm1, %v309_v54, %v355_v56  ;;  %v360_v59 = vsel %vm352_vm2, %v322_v55, %v356_v57 }
  0xb7   : > { %v363_v60 = vpack.c.bf16 %v360_v59, %v359_v58 }
  0xb8   : > { %v334_v61 = vpop.f32.mrf.mxu2  ;;  %v347_v63 = vpop.f32.mrf.mxu3 }
  0xb9   : > { %v335_v62 = vadd.f32 %v334_v61, %v233_v51  ;;  %v310_v0 = vpop.f32.mrf.mxu0  ;;  %v348_v1 = vadd.f32 %v347_v63, %v233_v51  ;;  %365 = vst [vmem:[%s213_s11] sm:$0xff] %v363_v60  ;;  %v323_v2 = vpop.f32.mrf.mxu1 }
  0xbb   : > { %vm353_vm3 = vcmp.gt.f32.partialorder %v335_v62, 0.0  ;;  %v357_v3 = vmul.f32 0.2, %v335_v62  ;;  %vm354_vm4 = vcmp.gt.f32.partialorder %v348_v1, 0.0  ;;  %v358_v4 = vmul.f32 0.2, %v348_v1 }
  0xbd   : > { %v361_v5 = vsel %vm353_vm3, %v335_v62, %v357_v3  ;;  %v362_v6 = vsel %vm354_vm4, %v348_v1, %v358_v4 }
  0xbe   : > { %v364_v7 = vpack.c.bf16 %v362_v6, %v361_v5 }
  0xc0   : > { %v336_v8 = vpop.f32.mrf.mxu2  ;;  %366 = vst [vmem:[%s213_s11 + $0x8] sm:$0xff] %v364_v7  ;;  %v349_v9 = vpop.f32.mrf.mxu3 }
  0xc1 PF: > { %p10_p9 = scmp.ge.s32.totalorder %s595_s16, 6   ;;  %s666_s12 = smov %s551_s13 }
  0xc2   : > { %s667_s13 = smov %s604_s19  ;;  %s668_s14 = smov %s595_s16 }
  0xc3   :  { %12 = sbr.rel (!%p10_p9) target bundleno = 2 (0x2), region = 90 }

// kernel: discriminator_forward.5
= control target key start
LH: loop header
LB: loop body
LE: loop exit
PB: predicated region body
PF: predicated region fallthrough
CT: control target
= control target key end

     0   :  { %s719_s2 = inlined_call_operand.vmem [shape: bf16[128,512], index: 2, kind: input, shape index: {}]   ;;  %s720_s1 = inlined_call_operand.vmem [shape: f32[16,1], index: 1, kind: input, shape index: {}]   ;;  %s721_s0 = inlined_call_operand.vmem [shape: bf16[16,128], index: 0, kind: input, shape index: {}]   ;;  %s722_s3 = inlined_call_operand.vmem [shape: bf16[16,512], index: 3, kind: output, shape index: {}]  }
   0x1   :  { %v436_v0 = vld [vmem:[%s719_s2 + $0xe0] sm:$0xf]  ;;  %v481_v1 = vld [vmem:[%s719_s2 + $0xec] sm:$0xf0]  ;;  %v479_v2 = vld [vmem:[%s719_s2 + $0xe4] sm:$0xf] }
   0x2   :  { %v437_v3 = vor.u32 %v481_v1, %v436_v0  ;;  %v438_v4 = vld [vmem:[%s719_s2 + $0xf0] sm:$0xf0]  ;;  %v444_v5 = vld [vmem:[%s719_s2 + $0xe8] sm:$0xf]  ;;  %v482_v6 = vld [vmem:[%s719_s2 + $0xf4] sm:$0xf0] }
   0x3   :  { %v441_v7 = vor.u32 %v479_v2, %v438_v4  ;;  %v445_v8 = vor.u32 %v482_v6, %v444_v5  ;;  %v480_v9 = vld [vmem:[%s719_s2 + $0xec] sm:$0xf]  ;;  %v446_v10 = vld [vmem:[%s719_s2 + $0xf8] sm:$0xf0]  ;;  %v420_v11 = vld [vmem:[%s719_s2 + $0xc0] sm:$0xf] }
   0x4   :  { %226 = vmatpush.bf16.msra.mxu0 %v437_v3  ;;  %v449_v12 = vor.u32 %v480_v9, %v446_v10  ;;  %v477_v13 = vld [vmem:[%s719_s2 + $0xcc] sm:$0xf0]  ;;  %v475_v14 = vld [vmem:[%s719_s2 + $0xc4] sm:$0xf]  ;;  %v422_v15 = vld [vmem:[%s719_s2 + $0xd0] sm:$0xf0] }
   0x5   :  { %240 = vmatpush.bf16.msra.mxu1 %v441_v7  ;;  %254 = vmatpush.bf16.msra.mxu2 %v445_v8  ;;  %v421_v16 = vor.u32 %v477_v13, %v420_v11  ;;  %v425_v17 = vor.u32 %v475_v14, %v422_v15  ;;  %v428_v18 = vld [vmem:[%s719_s2 + $0xc8] sm:$0xf]  ;;  %v478_v19 = vld [vmem:[%s719_s2 + $0xd4] sm:$0xf0]  ;;  %v476_v20 = vld [vmem:[%s719_s2 + $0xcc] sm:$0xf] }
   0x6   :  { %268 = vmatpush.bf16.msra.mxu3 %v449_v12  ;;  %v429_v21 = vor.u32 %v478_v19, %v428_v18  ;;  %v430_v22 = vld [vmem:[%s719_s2 + $0xd8] sm:$0xf0]  ;;  %v404_v23 = vld [vmem:[%s719_s2 + $0xa0] sm:$0xf]  ;;  %v473_v24 = vld [vmem:[%s719_s2 + $0xac] sm:$0xf0] }
   0x7   :  { %v433_v25 = vor.u32 %v476_v20, %v430_v22  ;;  %v471_v26 = vld [vmem:[%s719_s2 + $0xa4] sm:$0xf]  ;;  %v406_v27 = vld [vmem:[%s719_s2 + $0xb0] sm:$0xf0]  ;;  %v412_v28 = vld [vmem:[%s719_s2 + $0xa8] sm:$0xf]  ;;  %v405_v29 = vor.u32 %v473_v24, %v404_v23 }
   0x8   :  { %227 = vmatpush.bf16.msra.mxu0 %v421_v16  ;;  %v474_v30 = vld [vmem:[%s719_s2 + $0xb4] sm:$0xf0]  ;;  %v472_v31 = vld [vmem:[%s719_s2 + $0xac] sm:$0xf]  ;;  %v414_v32 = vld [vmem:[%s719_s2 + $0xb8] sm:$0xf0]  ;;  %v409_v33 = vor.u32 %v471_v26, %v406_v27 }
   0x9   :  { %241 = vmatpush.bf16.msra.mxu1 %v425_v17  ;;  %255 = vmatpush.bf16.msra.mxu2 %v429_v21  ;;  %v413_v34 = vor.u32 %v474_v30, %v412_v28  ;;  %v388_v35 = vld [vmem:[%s719_s2 + $0x80] sm:$0xf]  ;;  %v469_v36 = vld [vmem:[%s719_s2 + $0x8c] sm:$0xf0]  ;;  %v467_v37 = vld [vmem:[%s719_s2 + $0x84] sm:$0xf]  ;;  %v417_v38 = vor.u32 %v472_v31, %v414_v32 }
   0xa   :  { %269 = vmatpush.bf16.msra.mxu3 %v433_v25  ;;  %v390_v39 = vld [vmem:[%s719_s2 + $0x90] sm:$0xf0]  ;;  %v396_v40 = vld [vmem:[%s719_s2 + $0x88] sm:$0xf]  ;;  %v470_v41 = vld [vmem:[%s719_s2 + $0x94] sm:$0xf0]  ;;  %v389_v44 = vor.u32 %v469_v36, %v388_v35 }
   0xb   :  { %v468_v42 = vld [vmem:[%s719_s2 + $0x8c] sm:$0xf]  ;;  %v398_v43 = vld [vmem:[%s719_s2 + $0x98] sm:$0xf0]  ;;  %v393_v45 = vor.u32 %v467_v37, %v390_v39  ;;  %v397_v46 = vor.u32 %v470_v41, %v396_v40  ;;  %v372_v47 = vld [vmem:[%s719_s2 + $0x60] sm:$0xf] }
   0xc   :  { %228 = vmatpush.bf16.msra.mxu0 %v405_v29  ;;  %v465_v48 = vld [vmem:[%s719_s2 + $0x6c] sm:$0xf0]  ;;  %v463_v49 = vld [vmem:[%s719_s2 + $0x64] sm:$0xf]  ;;  %v401_v50 = vor.u32 %v468_v42, %v398_v43  ;;  %v374_v51 = vld [vmem:[%s719_s2 + $0x70] sm:$0xf0] }
   0xd   :  { %242 = vmatpush.bf16.msra.mxu1 %v409_v33  ;;  %256 = vmatpush.bf16.msra.mxu2 %v413_v34  ;;  %v380_v52 = vld [vmem:[%s719_s2 + $0x68] sm:$0xf]  ;;  %v466_v53 = vld [vmem:[%s719_s2 + $0x74] sm:$0xf0]  ;;  %v464_v54 = vld [vmem:[%s719_s2 + $0x6c] sm:$0xf]  ;;  %v373_v56 = vor.u32 %v465_v48, %v372_v47  ;;  %v377_v57 = vor.u32 %v463_v49, %v374_v51 }
   0xe   :  { %270 = vmatpush.bf16.msra.mxu3 %v417_v38  ;;  %v382_v55 = vld [vmem:[%s719_s2 + $0x78] sm:$0xf0]  ;;  %v381_v58 = vor.u32 %v466_v53, %v380_v52  ;;  %v356_v59 = vld [vmem:[%s719_s2 + $0x40] sm:$0xf]  ;;  %v461_v60 = vld [vmem:[%s719_s2 + $0x4c] sm:$0xf0] }
   0xf   :  { %v459_v61 = vld [vmem:[%s719_s2 + $0x44] sm:$0xf]  ;;  %v385_v62 = vor.u32 %v464_v54, %v382_v55  ;;  %v358_v63 = vld [vmem:[%s719_s2 + $0x50] sm:$0xf0]  ;;  %v364_v0 = vld [vmem:[%s719_s2 + $0x48] sm:$0xf]  ;;  %v357_v4 = vor.u32 %v461_v60, %v356_v59 }
  0x10   :  { %229 = vmatpush.bf16.msra.mxu0 %v389_v44  ;;  %v462_v1 = vld [vmem:[%s719_s2 + $0x54] sm:$0xf0]  ;;  %v460_v2 = vld [vmem:[%s719_s2 + $0x4c] sm:$0xf]  ;;  %v366_v3 = vld [vmem:[%s719_s2 + $0x58] sm:$0xf0]  ;;  %v361_v6 = vor.u32 %v459_v61, %v358_v63 }
  0x11   :  { %243 = vmatpush.bf16.msra.mxu1 %v393_v45  ;;  %257 = vmatpush.bf16.msra.mxu2 %v397_v46  ;;  %v340_v5 = vld [vmem:[%s719_s2 + $0x20] sm:$0xf]  ;;  %v365_v7 = vor.u32 %v462_v1, %v364_v0  ;;  %v457_v8 = vld [vmem:[%s719_s2 + $0x2c] sm:$0xf0]  ;;  %v455_v9 = vld [vmem:[%s719_s2 + $0x24] sm:$0xf]  ;;  %v369_v11 = vor.u32 %v460_v2, %v366_v3 }
  0x12   :  { %271 = vmatpush.bf16.msra.mxu3 %v401_v50  ;;  %v342_v10 = vld [vmem:[%s719_s2 + $0x30] sm:$0xf0]  ;;  %v348_v12 = vld [vmem:[%s719_s2 + $0x28] sm:$0xf]  ;;  %v458_v13 = vld [vmem:[%s719_s2 + $0x34] sm:$0xf0]  ;;  %v341_v18 = vor.u32 %v457_v8, %v340_v5 }
  0x13   :  { %v48_v14 = vld [vmem:[%s720_s1] sm:$0xff]  ;;  %v456_v15 = vld [vmem:[%s719_s2 + $0x2c] sm:$0xf]  ;;  %v350_v16 = vld [vmem:[%s719_s2 + $0x38] sm:$0xf0]  ;;  %v485_v17 = vmov 0   ;;  %v345_v19 = vor.u32 %v455_v9, %v342_v10  ;;  %v349_v20 = vor.u32 %v458_v13, %v348_v12 }
  0x14   :  { %230 = vmatpush.bf16.msra.mxu0 %v373_v56  ;;  %484 = vset.pattern.permute.xlu0 %v485_v17  ;;  %v324_v21 = vld [vmem:[%s719_s2] sm:$0xf]  ;;  %v453_v22 = vld [vmem:[%s719_s2 + $0xc] sm:$0xf0]  ;;  %v451_v23 = vld [vmem:[%s719_s2 + $0x4] sm:$0xf]  ;;  %v353_v24 = vor.u32 %v456_v15, %v350_v16 }
  0x15   :  { %244 = vmatpush.bf16.msra.mxu1 %v377_v57  ;;  %258 = vmatpush.bf16.msra.mxu2 %v381_v58  ;;  %v326_v25 = vld [vmem:[%s719_s2 + $0x10] sm:$0xf0]  ;;  %v332_v26 = vld [vmem:[%s719_s2 + $0x8] sm:$0xf]  ;;  %v454_v27 = vld [vmem:[%s719_s2 + $0x14] sm:$0xf0]  ;;  %v325_v30 = vor.u32 %v453_v22, %v324_v21 }
  0x16   :  { %272 = vmatpush.bf16.msra.mxu3 %v385_v62  ;;  %52 = vperm.xlu0 %484, %v48_v14   ;;  %v452_v28 = vld [vmem:[%s719_s2 + $0xc] sm:$0xf]  ;;  %v334_v29 = vld [vmem:[%s719_s2 + $0x18] sm:$0xf0]  ;;  %v329_v31 = vor.u32 %v451_v23, %v326_v25  ;;  %v333_v32 = vor.u32 %v454_v27, %v332_v26  ;;  %v450_v35 = vld [vmem:[%s721_s0] sm:$0xff] }
  0x17   :  { %v49_v33 = vld [vmem:[%s720_s1 + $0x8] sm:$0xff]  ;;  %v337_v34 = vor.u32 %v452_v28, %v334_v29 }
  0x18   :  { %231 = vmatpush.bf16.msra.mxu0 %v357_v4 }
  0x19   :  { %245 = vmatpush.bf16.msra.mxu1 %v361_v6  ;;  %259 = vmatpush.bf16.msra.mxu2 %v365_v7 }
  0x1a   :  { %273 = vmatpush.bf16.msra.mxu3 %v369_v11 }
  0x1c   :  { %232 = vmatpush.bf16.msra.mxu0 %v341_v18 }
  0x1d   :  { %246 = vmatpush.bf16.msra.mxu1 %v345_v19  ;;  %260 = vmatpush.bf16.msra.mxu2 %v349_v20 }
  0x1e   :  { %274 = vmatpush.bf16.msra.mxu3 %v353_v24  ;;  %57 = vperm.xlu0 %484, %v49_v33  }
  0x20   :  { %233 = vmatpush.bf16.msra.mxu0 %v325_v30 }
  0x21   :  { %247 = vmatpush.bf16.msra.mxu1 %v329_v31  ;;  %261 = vmatpush.bf16.msra.mxu2 %v333_v32 }
  0x22   :  { %275 = vmatpush.bf16.msra.mxu3 %v337_v34 }
  0x23   :  { %234 = vmatmul.bf16.vlgmr.msra.gmra.mxu0 %v450_v35 }
  0x24   :  { %248 = vmatmul.bf16.vlgmr.msra.gmra.mxu1 %v450_v35  ;;  %262 = vmatmul.bf16.vlgmr.msra.gmra.mxu2 %v450_v35 }
  0x25   :  { %276 = vmatmul.bf16.vlgmr.msra.gmra.mxu3 %v450_v35 }
  0x88   :  { %v53_v36 = vpop.permute.xlu0 %52 }
  0x90   :  { %v58_v46 = vpop.permute.xlu0 %57 }
  0xa0   :  { %v235_v37 = vpop.f32.mrf.mxu0 }
  0xa1   :  { %v236_v38 = vadd.f32 %v235_v37, %v53_v36  ;;  %v249_v39 = vpop.f32.mrf.mxu1 }
  0xa2   :  { %v250_v40 = vadd.f32 %v249_v39, %v53_v36 }
  0xa3   :  { %vm282_vm0 = vcmp.gt.f32.partialorder %v236_v38, 0.0  ;;  %v290_v41 = vmul.f32 0.2, %v236_v38 }
  0xa4   :  { %vm283_vm1 = vcmp.gt.f32.partialorder %v250_v40, 0.0  ;;  %v291_v42 = vmul.f32 0.2, %v250_v40 }
  0xa5   :  { %v298_v43 = vsel %vm282_vm0, %v236_v38, %v290_v41 }
  0xa6   :  { %v299_v44 = vsel %vm283_vm1, %v250_v40, %v291_v42 }
  0xa7   :  { %v306_v45 = vpack.c.bf16 %v299_v44, %v298_v43  ;;  %v263_v47 = vpop.f32.mrf.mxu2 }
  0xa8   :  { %v264_v48 = vadd.f32 %v263_v47, %v53_v36  ;;  %v277_v49 = vpop.f32.mrf.mxu3  ;;  %v237_v50 = vpop.f32.mrf.mxu0 }
  0xa9   :  { %310 = vst [vmem:[%s722_s3] sm:$0xff] %v306_v45  ;;  %v278_v51 = vadd.f32 %v277_v49, %v53_v36  ;;  %v238_v52 = vadd.f32 %v237_v50, %v58_v46  ;;  %v251_v53 = vpop.f32.mrf.mxu1 }
  0xaa   :  { %vm284_vm2 = vcmp.gt.f32.partialorder %v264_v48, 0.0  ;;  %v292_v54 = vmul.f32 0.2, %v264_v48  ;;  %v252_v55 = vadd.f32 %v251_v53, %v58_v46 }
  0xab   :  { %vm285_vm3 = vcmp.gt.f32.partialorder %v278_v51, 0.0  ;;  %v293_v56 = vmul.f32 0.2, %v278_v51  ;;  %vm286_vm4 = vcmp.gt.f32.partialorder %v238_v52, 0.0  ;;  %v294_v57 = vmul.f32 0.2, %v238_v52 }
  0xac   :  { %v300_v58 = vsel %vm284_vm2, %v264_v48, %v292_v54  ;;  %vm287_vm5 = vcmp.gt.f32.partialorder %v252_v55, 0.0  ;;  %v295_v59 = vmul.f32 0.2, %v252_v55 }
  0xad   :  { %v301_v60 = vsel %vm285_vm3, %v278_v51, %v293_v56  ;;  %v302_v61 = vsel %vm286_vm4, %v238_v52, %v294_v57 }
  0xae   :  { %v307_v62 = vpack.c.bf16 %v301_v60, %v300_v58  ;;  %v303_v63 = vsel %vm287_vm5, %v252_v55, %v295_v59 }
  0xaf   :  { %v308_v0 = vpack.c.bf16 %v303_v63, %v302_v61  ;;  %v265_v1 = vpop.f32.mrf.mxu2 }
  0xb0   :  { %311 = vst [vmem:[%s722_s3 + $0x8] sm:$0xff] %v307_v62  ;;  %v266_v2 = vadd.f32 %v265_v1, %v58_v46  ;;  %v279_v3 = vpop.f32.mrf.mxu3 }
  0xb1   :  { %312 = vst [vmem:[%s722_s3 + $0x10] sm:$0xff] %v308_v0  ;;  %v280_v4 = vadd.f32 %v279_v3, %v58_v46 }
  0xb2   :  { %vm288_vm6 = vcmp.gt.f32.partialorder %v266_v2, 0.0  ;;  %v296_v5 = vmul.f32 0.2, %v266_v2 }
  0xb3   :  { %vm289_vm7 = vcmp.gt.f32.partialorder %v280_v4, 0.0  ;;  %v297_v6 = vmul.f32 0.2, %v280_v4 }
  0xb4   :  { %v304_v7 = vsel %vm288_vm6, %v266_v2, %v296_v5 }
  0xb5   :  { %v305_v8 = vsel %vm289_vm7, %v280_v4, %v297_v6 }
  0xb6   :  { %v309_v9 = vpack.c.bf16 %v305_v8, %v304_v7 }
  0xb8   :  { %313 = vst [vmem:[%s722_s3 + $0x18] sm:$0xff] %v309_v9 }

// kernel: discriminator_forward.6
= control target key start
LH: loop header
LB: loop body
LE: loop exit
PB: predicated region body
PF: predicated region fallthrough
CT: control target
= control target key end

     0   :  { %v382_v4 = vmov 0   ;;  %s493_s2 = inlined_call_operand.vmem [shape: bf16[256,128], index: 2, kind: input, shape index: {}]   ;;  %s494_s1 = inlined_call_operand.vmem [shape: f32[32,1], index: 1, kind: input, shape index: {}]   ;;  %s495_s0 = inlined_call_operand.vmem [shape: bf16[32,256], index: 0, kind: input, shape index: {}]   ;;  %s496_s3 = inlined_call_operand.vmem [shape: bf16[32,128], index: 3, kind: output, shape index: {}]  }
   0x1   :  { %v343_v0 = vld [vmem:[%s493_s2 + $0x38] sm:$0xff]  ;;  %v342_v2 = vld [vmem:[%s493_s2 + $0x30] sm:$0xff]  ;;  %381 = vset.pattern.permute.xlu1 %v382_v4  ;;  %380 = vset.pattern.permute.xlu0 %v382_v4  ;;  %v341_v5 = vld [vmem:[%s493_s2 + $0x28] sm:$0xff] }
   0x2   :  { %v351_v1 = vld [vmem:[%s493_s2 + $0x78] sm:$0xff]  ;;  %190 = vmatpush.bf16.msra.mxu0 %v343_v0  ;;  %363 = vmatpush.bf16.msra.mxu2 %v343_v0  ;;  %v350_v3 = vld [vmem:[%s493_s2 + $0x70] sm:$0xff]  ;;  %v349_v6 = vld [vmem:[%s493_s2 + $0x68] sm:$0xff] }
   0x3   :  { %209 = vmatpush.bf16.msra.mxu1 %v351_v1  ;;  %371 = vmatpush.bf16.msra.mxu3 %v351_v1  ;;  %v52_v7 = vld [vmem:[%s494_s1 + $0x10] sm:$0xff]  ;;  %v50_v8 = vld [vmem:[%s494_s1] sm:$0xff]  ;;  %v339_v11 = vld [vmem:[%s493_s2 + $0x18] sm:$0xff] }
   0x4   :  { %66 = vperm.xlu1 %381, %v52_v7   ;;  %56 = vperm.xlu0 %380, %v50_v8   ;;  %v340_v9 = vld [vmem:[%s493_s2 + $0x20] sm:$0xff]  ;;  %v53_v12 = vld [vmem:[%s494_s1 + $0x18] sm:$0xff]  ;;  %v51_v13 = vld [vmem:[%s494_s1 + $0x8] sm:$0xff] }
   0x5   :  { %v348_v10 = vld [vmem:[%s493_s2 + $0x60] sm:$0xff]  ;;  %v347_v14 = vld [vmem:[%s493_s2 + $0x58] sm:$0xff]  ;;  %v338_v15 = vld [vmem:[%s493_s2 + $0x10] sm:$0xff] }
   0x6   :  { %191 = vmatpush.bf16.msra.mxu0 %v342_v2  ;;  %364 = vmatpush.bf16.msra.mxu2 %v342_v2  ;;  %v346_v16 = vld [vmem:[%s493_s2 + $0x50] sm:$0xff]  ;;  %v337_v17 = vld [vmem:[%s493_s2 + $0x8] sm:$0xff]  ;;  %v336_v19 = vld [vmem:[%s493_s2] sm:$0xff] }
   0x7   :  { %210 = vmatpush.bf16.msra.mxu1 %v350_v3  ;;  %372 = vmatpush.bf16.msra.mxu3 %v350_v3  ;;  %v345_v18 = vld [vmem:[%s493_s2 + $0x48] sm:$0xff]  ;;  %v344_v20 = vld [vmem:[%s493_s2 + $0x40] sm:$0xff]  ;;  %v262_v23 = vld [vmem:[%s495_s0 + $0x10] sm:$0xf] }
   0x8   :  { %v254_v21 = vld [vmem:[%s495_s0] sm:$0xf]  ;;  %v333_v22 = vld [vmem:[%s495_s0 + $0x4] sm:$0xf0]  ;;  %v335_v24 = vld [vmem:[%s495_s0 + $0x14] sm:$0xf0] }
   0x9   :  { %v332_v25 = vld [vmem:[%s495_s0 + $0x4] sm:$0xf]  ;;  %v256_v26 = vld [vmem:[%s495_s0 + $0x8] sm:$0xf0]  ;;  %v334_v27 = vld [vmem:[%s495_s0 + $0x14] sm:$0xf]  ;;  %v255_v29 = vor.u32 %v333_v22, %v254_v21  ;;  %v263_v30 = vor.u32 %v335_v24, %v262_v23 }
   0xa   :  { %192 = vmatpush.bf16.msra.mxu0 %v341_v5  ;;  %365 = vmatpush.bf16.msra.mxu2 %v341_v5  ;;  %v264_v28 = vld [vmem:[%s495_s0 + $0x18] sm:$0xf0]  ;;  %v259_v31 = vor.u32 %v332_v25, %v256_v26 }
   0xb   :  { %211 = vmatpush.bf16.msra.mxu1 %v349_v6  ;;  %373 = vmatpush.bf16.msra.mxu3 %v349_v6  ;;  %v267_v32 = vor.u32 %v334_v27, %v264_v28 }
   0xc   :  { %71 = vperm.xlu1 %381, %v53_v12   ;;  %61 = vperm.xlu0 %380, %v51_v13  }
   0xe   :  { %193 = vmatpush.bf16.msra.mxu0 %v340_v9  ;;  %366 = vmatpush.bf16.msra.mxu2 %v340_v9 }
   0xf   :  { %212 = vmatpush.bf16.msra.mxu1 %v348_v10  ;;  %374 = vmatpush.bf16.msra.mxu3 %v348_v10 }
  0x12   :  { %194 = vmatpush.bf16.msra.mxu0 %v339_v11  ;;  %367 = vmatpush.bf16.msra.mxu2 %v339_v11 }
  0x13   :  { %213 = vmatpush.bf16.msra.mxu1 %v347_v14  ;;  %375 = vmatpush.bf16.msra.mxu3 %v347_v14 }
  0x16   :  { %195 = vmatpush.bf16.msra.mxu0 %v338_v15  ;;  %368 = vmatpush.bf16.msra.mxu2 %v338_v15 }
  0x17   :  { %214 = vmatpush.bf16.msra.mxu1 %v346_v16  ;;  %376 = vmatpush.bf16.msra.mxu3 %v346_v16 }
  0x1a   :  { %196 = vmatpush.bf16.msra.mxu0 %v337_v17  ;;  %369 = vmatpush.bf16.msra.mxu2 %v337_v17 }
  0x1b   :  { %215 = vmatpush.bf16.msra.mxu1 %v345_v18  ;;  %377 = vmatpush.bf16.msra.mxu3 %v345_v18 }
  0x1e   :  { %197 = vmatpush.bf16.msra.mxu0 %v336_v19  ;;  %370 = vmatpush.bf16.msra.mxu2 %v336_v19 }
  0x1f   :  { %216 = vmatpush.bf16.msra.mxu1 %v344_v20  ;;  %378 = vmatpush.bf16.msra.mxu3 %v344_v20 }
  0x21   :  { %198 = vmatmul.bf16.vlgmr.msra.gmra.mxu0 %v255_v29  ;;  %203 = vmatmul.bf16.vlgmr.msra.gmra.mxu2 %v263_v30 }
  0x22   :  { %217 = vmatmul.bf16.vlgmr.msra.gmra.mxu1 %v259_v31  ;;  %222 = vmatmul.bf16.vlgmr.msra.gmra.mxu3 %v267_v32 }
  0x76   :  { %v57_v33 = vpop.permute.xlu0 %56  ;;  %v67_v37 = vpop.permute.xlu1 %66 }
  0x7e   :  { %v62_v41 = vpop.permute.xlu0 %61  ;;  %v72_v50 = vpop.permute.xlu1 %71 }
  0x9e   :  { %v199_v34 = vpop.f32.mrf.mxu0 }
  0x9f   :  { %v218_v35 = vpop.f32.mrf.mxu1  ;;  %v200_v36 = vadd.f32 %v199_v34, %v57_v33 }
  0xa1   :  { %v219_v39 = vadd.f32 %v218_v35, %v200_v36 }
  0xa3   :  { %v232_v46 = vmul.f32 0.2, %v219_v39  ;;  %vm228_vm0 = vcmp.gt.f32.partialorder %v219_v39, 0.0 }
  0xa4   :  { %v204_v38 = vpop.f32.mrf.mxu2 }
  0xa5   :  { %v223_v40 = vpop.f32.mrf.mxu3  ;;  %v205_v43 = vadd.f32 %v204_v38, %v67_v37  ;;  %v236_v52 = vsel %vm228_vm0, %v219_v39, %v232_v46 }
  0xa6   :  { %v201_v42 = vpop.f32.mrf.mxu0 }
  0xa7   :  { %v202_v44 = vadd.f32 %v201_v42, %v62_v41  ;;  %v220_v45 = vpop.f32.mrf.mxu1  ;;  %v224_v48 = vadd.f32 %v223_v40, %v205_v43 }
  0xa9   :  { %v221_v47 = vadd.f32 %v220_v45, %v202_v44  ;;  %v234_v57 = vmul.f32 0.2, %v224_v48  ;;  %vm230_vm2 = vcmp.gt.f32.partialorder %v224_v48, 0.0 }
  0xab   :  { %vm229_vm1 = vcmp.gt.f32.partialorder %v221_v47, 0.0  ;;  %v233_v49 = vmul.f32 0.2, %v221_v47  ;;  %v238_v60 = vsel %vm230_vm2, %v224_v48, %v234_v57 }
  0xac   :  { %v206_v51 = vpop.f32.mrf.mxu2 }
  0xad   :  { %v237_v53 = vsel %vm229_vm1, %v221_v47, %v233_v49  ;;  %v207_v54 = vadd.f32 %v206_v51, %v72_v50  ;;  %v225_v56 = vpop.f32.mrf.mxu3 }
  0xae   :  { %v355_v55 = vpack.c.bf16 %v237_v53, %v236_v52 }
  0xaf   :  { %v226_v58 = vadd.f32 %v225_v56, %v207_v54 }
  0xb0   :  { %356 = vst [vmem:[%s496_s3] sm:$0xff] %v355_v55  }
  0xb1   :  { %vm231_vm3 = vcmp.gt.f32.partialorder %v226_v58, 0.0  ;;  %v235_v59 = vmul.f32 0.2, %v226_v58 }
  0xb3   :  { %v239_v61 = vsel %vm231_vm3, %v226_v58, %v235_v59 }
  0xb4   :  { %v360_v62 = vpack.c.bf16 %v239_v61, %v238_v60 }
  0xb6   :  { %362 = vst [vmem:[%s496_s3 + $0x8] sm:$0xff] %v360_v62  }

// kernel: discriminator_forward.7
= control target key start
LH: loop header
LB: loop body
LE: loop exit
PB: predicated region body
PF: predicated region fallthrough
CT: control target
= control target key end

     0   :  { %s1188_s0 = inlined_call_operand.vmem [shape: bf16[64,512], index: 0, kind: input, shape index: {}]   ;;  %s1189_s1 = inlined_call_operand.vmem [shape: bf16[512,32], index: 1, kind: input, shape index: {}]   ;;  %s1190_s2 = inlined_call_operand.vmem [shape: bf16[64,32], index: 2, kind: input, shape index: {}]   ;;  %s1191_s3 = inlined_call_operand.vmem [shape: f32[32,2], index: 3, kind: input, shape index: {}]   ;;  %s1192_s4 = inlined_call_operand.<no memory space> [shape: f32[1,1], index: 4, kind: input, shape index: {}]   ;;  %s1193_s5 = inlined_call_operand.hbm [shape: f32[1,2], index: 5, kind: output, shape index: {}]  }
   0x1   :  { %v10_v0 = vstv %s1192_s4 }
   0x2   :  { %11 = vst [vmem:[#allocation2] sm:$0x1] %v10_v0 }
   0x3   :  { %v848_v1 = vld [vmem:[%s1189_s1 + $0x38] sm:$0xff]  ;;  %v847_v5 = vld [vmem:[%s1189_s1 + $0x30] sm:$0xff]  ;;  %v846_v9 = vld [vmem:[%s1189_s1 + $0x28] sm:$0xff] }
   0x4   :  { %v856_v2 = vld [vmem:[%s1189_s1 + $0x78] sm:$0xff]  ;;  %375 = vmatpush.bf16.msra.mxu0 %v848_v1  ;;  %v855_v6 = vld [vmem:[%s1189_s1 + $0x70] sm:$0xff]  ;;  %v854_v10 = vld [vmem:[%s1189_s1 + $0x68] sm:$0xff] }
   0x5   :  { %v864_v3 = vld [vmem:[%s1189_s1 + $0xb8] sm:$0xff]  ;;  %404 = vmatpush.bf16.msra.mxu1 %v856_v2  ;;  %v863_v7 = vld [vmem:[%s1189_s1 + $0xb0] sm:$0xff]  ;;  %v862_v11 = vld [vmem:[%s1189_s1 + $0xa8] sm:$0xff] }
   0x6   :  { %v872_v4 = vld [vmem:[%s1189_s1 + $0xf8] sm:$0xff]  ;;  %433 = vmatpush.bf16.msra.mxu2 %v864_v3  ;;  %v871_v8 = vld [vmem:[%s1189_s1 + $0xf0] sm:$0xff]  ;;  %v870_v12 = vld [vmem:[%s1189_s1 + $0xe8] sm:$0xff] }
   0x7   :  { %462 = vmatpush.bf16.msra.mxu3 %v872_v4  ;;  %v845_v13 = vld [vmem:[%s1189_s1 + $0x20] sm:$0xff]  ;;  %v844_v17 = vld [vmem:[%s1189_s1 + $0x18] sm:$0xff] }
   0x8   :  { %376 = vmatpush.bf16.msra.mxu0 %v847_v5  ;;  %v853_v14 = vld [vmem:[%s1189_s1 + $0x60] sm:$0xff]  ;;  %v852_v18 = vld [vmem:[%s1189_s1 + $0x58] sm:$0xff] }
   0x9   :  { %405 = vmatpush.bf16.msra.mxu1 %v855_v6  ;;  %v861_v15 = vld [vmem:[%s1189_s1 + $0xa0] sm:$0xff] }
   0xa   :  { %434 = vmatpush.bf16.msra.mxu2 %v863_v7  ;;  %v869_v16 = vld [vmem:[%s1189_s1 + $0xe0] sm:$0xff] }
   0xb   :  { %463 = vmatpush.bf16.msra.mxu3 %v871_v8 }
   0xc   :  { %377 = vmatpush.bf16.msra.mxu0 %v846_v9 }
   0xd   :  { %406 = vmatpush.bf16.msra.mxu1 %v854_v10 }
   0xe   :  { %435 = vmatpush.bf16.msra.mxu2 %v862_v11 }
   0xf   :  { %464 = vmatpush.bf16.msra.mxu3 %v870_v12 }
  0x10   :  { %378 = vmatpush.bf16.msra.mxu0 %v845_v13 }
  0x11   :  { %407 = vmatpush.bf16.msra.mxu1 %v853_v14 }
  0x12   :  { %12 = vsyncpa [#allocation4], 0  ;;  %436 = vmatpush.bf16.msra.mxu2 %v861_v15  ;;  %v860_v19 = vld [vmem:[%s1189_s1 + $0x98] sm:$0xff]  ;;  %v843_v21 = vld [vmem:[%s1189_s1 + $0x10] sm:$0xff]  ;;  %vm539_vm6 = vcmask 261120   ;;  %s623_s6 = sshll.u32 %s1193_s5, 4  ;;  %s624_s6 = int_to_ptr.hbm [resolvable:$true] %s623_s6 }
  0x13   :  { %465 = vmatpush.bf16.msra.mxu3 %v869_v16  ;;  %v868_v20 = vld [vmem:[%s1189_s1 + $0xd8] sm:$0xff]  ;;  %v851_v22 = vld [vmem:[%s1189_s1 + $0x50] sm:$0xff]  ;;  %v842_v25 = vld [vmem:[%s1189_s1 + $0x8] sm:$0xff]  ;;  %vm614_vm12 = vcmask 8192  }
  0x14   :  { %379 = vmatpush.bf16.msra.mxu0 %v844_v17  ;;  %v859_v23 = vld [vmem:[%s1189_s1 + $0x90] sm:$0xff]  ;;  %v850_v26 = vld [vmem:[%s1189_s1 + $0x48] sm:$0xff]  ;;  %v841_v29 = vld [vmem:[%s1189_s1] sm:$0xff] }
  0x15   :  { %408 = vmatpush.bf16.msra.mxu1 %v852_v18  ;;  %v867_v24 = vld [vmem:[%s1189_s1 + $0xd0] sm:$0xff]  ;;  %v858_v27 = vld [vmem:[%s1189_s1 + $0x88] sm:$0xff]  ;;  %v849_v30 = vld [vmem:[%s1189_s1 + $0x40] sm:$0xff] }
  0x16   :  { %437 = vmatpush.bf16.msra.mxu2 %v860_v19  ;;  %v866_v28 = vld [vmem:[%s1189_s1 + $0xc8] sm:$0xff]  ;;  %v857_v31 = vld [vmem:[%s1189_s1 + $0x80] sm:$0xff]  ;;  %v827_v34 = vld [vmem:[%s1188_s0 + $0xc] sm:$0xf0] }
  0x17   :  { %466 = vmatpush.bf16.msra.mxu3 %v868_v20  ;;  %v865_v32 = vld [vmem:[%s1189_s1 + $0xc0] sm:$0xff]  ;;  %v636_v36 = vld [vmem:[%s1188_s0 + $0x10] sm:$0xf0]  ;;  %v642_v37 = vld [vmem:[%s1188_s0 + $0x8] sm:$0xf] }
  0x18   :  { %380 = vmatpush.bf16.msra.mxu0 %v843_v21  ;;  %v634_v33 = vld [vmem:[%s1188_s0] sm:$0xf]  ;;  %v825_v35 = vld [vmem:[%s1188_s0 + $0x4] sm:$0xf]  ;;  %v828_v38 = vld [vmem:[%s1188_s0 + $0x14] sm:$0xf0] }
  0x19   :  { %409 = vmatpush.bf16.msra.mxu1 %v851_v22  ;;  %v826_v39 = vld [vmem:[%s1188_s0 + $0xc] sm:$0xf]  ;;  %v644_v40 = vld [vmem:[%s1188_s0 + $0x18] sm:$0xf0]  ;;  %v635_v41 = vor.u32 %v827_v34, %v634_v33  ;;  %v639_v42 = vor.u32 %v825_v35, %v636_v36  ;;  %v643_v43 = vor.u32 %v828_v38, %v642_v37  ;;  %v650_v45 = vld [vmem:[%s1188_s0 + $0x20] sm:$0xf] }
  0x1a   :  { %438 = vmatpush.bf16.msra.mxu2 %v859_v23  ;;  %v647_v44 = vor.u32 %v826_v39, %v644_v40  ;;  %v831_v46 = vld [vmem:[%s1188_s0 + $0x2c] sm:$0xf0]  ;;  %v829_v47 = vld [vmem:[%s1188_s0 + $0x24] sm:$0xf]  ;;  %v652_v48 = vld [vmem:[%s1188_s0 + $0x30] sm:$0xf0] }
  0x1b   :  { %467 = vmatpush.bf16.msra.mxu3 %v867_v24  ;;  %v658_v49 = vld [vmem:[%s1188_s0 + $0x28] sm:$0xf]  ;;  %v832_v50 = vld [vmem:[%s1188_s0 + $0x34] sm:$0xf0]  ;;  %v830_v51 = vld [vmem:[%s1188_s0 + $0x2c] sm:$0xf]  ;;  %v651_v53 = vor.u32 %v831_v46, %v650_v45  ;;  %v655_v54 = vor.u32 %v829_v47, %v652_v48 }
  0x1c   :  { %381 = vmatpush.bf16.msra.mxu0 %v842_v25  ;;  %v660_v52 = vld [vmem:[%s1188_s0 + $0x38] sm:$0xf0]  ;;  %v659_v55 = vor.u32 %v832_v50, %v658_v49  ;;  %v666_v57 = vld [vmem:[%s1188_s0 + $0x40] sm:$0xf]  ;;  %v835_v58 = vld [vmem:[%s1188_s0 + $0x4c] sm:$0xf0] }
  0x1d   :  { %410 = vmatpush.bf16.msra.mxu1 %v850_v26  ;;  %v663_v56 = vor.u32 %v830_v51, %v660_v52  ;;  %v833_v59 = vld [vmem:[%s1188_s0 + $0x44] sm:$0xf]  ;;  %v668_v60 = vld [vmem:[%s1188_s0 + $0x50] sm:$0xf0]  ;;  %v674_v61 = vld [vmem:[%s1188_s0 + $0x48] sm:$0xf]  ;;  %v667_v1 = vor.u32 %v835_v58, %v666_v57 }
  0x1e   :  { %439 = vmatpush.bf16.msra.mxu2 %v858_v27  ;;  %v836_v62 = vld [vmem:[%s1188_s0 + $0x54] sm:$0xf0]  ;;  %v834_v63 = vld [vmem:[%s1188_s0 + $0x4c] sm:$0xf]  ;;  %v676_v0 = vld [vmem:[%s1188_s0 + $0x58] sm:$0xf0]  ;;  %v671_v2 = vor.u32 %v833_v59, %v668_v60 }
  0x1f   :  { %468 = vmatpush.bf16.msra.mxu3 %v866_v28  ;;  %v675_v3 = vor.u32 %v836_v62, %v674_v61  ;;  %v679_v4 = vor.u32 %v834_v63, %v676_v0  ;;  %v682_v5 = vld [vmem:[%s1188_s0 + $0x60] sm:$0xf]  ;;  %v839_v6 = vld [vmem:[%s1188_s0 + $0x6c] sm:$0xf0]  ;;  %v837_v7 = vld [vmem:[%s1188_s0 + $0x64] sm:$0xf] }
  0x20   :  { %382 = vmatpush.bf16.msra.mxu0 %v841_v29  ;;  %v684_v8 = vld [vmem:[%s1188_s0 + $0x70] sm:$0xf0]  ;;  %v690_v9 = vld [vmem:[%s1188_s0 + $0x68] sm:$0xf]  ;;  %v840_v10 = vld [vmem:[%s1188_s0 + $0x74] sm:$0xf0]  ;;  %v683_v13 = vor.u32 %v839_v6, %v682_v5 }
  0x21   :  { %411 = vmatpush.bf16.msra.mxu1 %v849_v30  ;;  %v838_v11 = vld [vmem:[%s1188_s0 + $0x6c] sm:$0xf]  ;;  %v692_v12 = vld [vmem:[%s1188_s0 + $0x78] sm:$0xf0]  ;;  %v687_v14 = vor.u32 %v837_v7, %v684_v8  ;;  %v691_v15 = vor.u32 %v840_v10, %v690_v9  ;;  %v563_v28 = vld [vmem:[%s1191_s3 + $0x10] sm:$0xff] }
  0x22   :  { %440 = vmatpush.bf16.msra.mxu2 %v857_v31  ;;  %v695_v16 = vor.u32 %v838_v11, %v692_v12  ;;  %v564_v19 = vld [vmem:[%s1191_s3 + $0x18] sm:$0xff]  ;;  %v562_v37 = vld [vmem:[%s1191_s3 + $0x8] sm:$0xff] }
  0x23   :  { %469 = vmatpush.bf16.msra.mxu3 %v865_v32  ;;  %383 = vmatmul.bf16.vlgmr.msra.gmra.mxu0 %v635_v41 }
  0x24   :  { %412 = vmatmul.bf16.vlgmr.msra.gmra.mxu1 %v639_v42  ;;  %587 = vmatpush.msrb.mxu0 %v564_v19 }
  0x25   :  { %441 = vmatmul.bf16.vlgmr.msra.gmra.mxu2 %v643_v43 }
  0x26   :  { %470 = vmatmul.bf16.vlgmr.msra.gmra.mxu3 %v647_v44  ;;  %588 = vmatpush.msrb.mxu0 %v563_v28 }
  0x28   :  { %589 = vmatpush.msrb.mxu0 %v562_v37 }
  0x33   :  { %388 = vmatmul.bf16.gmra.mxu0 %v651_v53 }
  0x34   :  { %417 = vmatmul.bf16.gmra.mxu1 %v655_v54 }
  0x35   :  { %446 = vmatmul.bf16.gmra.mxu2 %v659_v55 }
  0x36   :  { %475 = vmatmul.bf16.gmra.mxu3 %v663_v56  ;;  %v561_v56 = vld [vmem:[%s1191_s3] sm:$0xff] }
  0x37   :  { %590 = vmatpush.msrb.mxu0 %v561_v56 }
  0x43   :  { %393 = vmatmul.bf16.gmra.mxu0 %v667_v1  ;;  %v874_v1 = vld [vmem:[%s1190_s2] sm:$0xff]  }
  0x44   :  { %422 = vmatmul.bf16.gmra.mxu1 %v671_v2  ;;  %v876_v5 = vunpack.c.h.bf16 %v874_v1  ;;  %v875_v10 = vunpack.c.l.bf16 %v874_v1 }
  0x45   :  { %451 = vmatmul.bf16.gmra.mxu2 %v675_v3  ;;  %v889_v3 = vld [vmem:[%s1190_s2 + $0x8] sm:$0xff]  }
  0x46   :  { %480 = vmatmul.bf16.gmra.mxu3 %v679_v4  ;;  %v879_v11 = vunpack.c.l.bf16 %v889_v3 }
  0x53   :  { %398 = vmatmul.bf16.gmra.mxu0 %v683_v13 }
  0x54   :  { %427 = vmatmul.bf16.gmra.mxu1 %v687_v14 }
  0x55   :  { %456 = vmatmul.bf16.gmra.mxu2 %v691_v15  ;;  %v890_v15 = vld [vmem:[%s1190_s2 + $0x10] sm:$0xff]  }
  0x56   :  { %485 = vmatmul.bf16.gmra.mxu3 %v695_v16 }
  0xa0   :  { %v384_v17 = vpop.f32.mrf.mxu0 }
  0xa1   :  { %v413_v18 = vpop.f32.mrf.mxu1 }
  0xa2   :  { %v414_v38 = vadd.f32 %v413_v18, %v384_v17  ;;  %v880_v17 = vunpack.c.h.bf16 %v889_v3 }
  0xa8   :  { %v442_v20 = vpop.f32.mrf.mxu2  ;;  %v386_v22 = vpop.f32.mrf.mxu0 }
  0xa9   :  { %v471_v21 = vpop.f32.mrf.mxu3  ;;  %v415_v23 = vpop.f32.mrf.mxu1  ;;  %v443_v46 = vadd.f32 %v442_v20, %v414_v38 }
  0xaa   :  { %v416_v39 = vadd.f32 %v415_v23, %v386_v22  ;;  %v565_v23 = vld [vmem:[#allocation2] sm:$0x1] }
  0xab   :  { %v472_v52 = vadd.f32 %v471_v21, %v443_v46 }
  0xad   :  { %v499_v0 = vmul.f32 0.2, %v472_v52  ;;  %vm491_vm1 = vcmp.gt.f32.partialorder %v472_v52, 0.0 }
  0xaf   :  { %v507_v12 = vsel %vm491_vm1, %v472_v52, %v499_v0 }
  0xb0   :  { %v444_v24 = vpop.f32.mrf.mxu2  ;;  %v389_v26 = vpop.f32.mrf.mxu0 }
  0xb1   :  { %v473_v25 = vpop.f32.mrf.mxu3  ;;  %v418_v27 = vpop.f32.mrf.mxu1  ;;  %v445_v43 = vadd.f32 %v444_v24, %v416_v39  ;;  %v531_v24 = vmul.f32 %v875_v10, %v507_v12 }
  0xb2   :  { %v419_v40 = vadd.f32 %v418_v27, %v389_v26  ;;  %v883_v26 = vunpack.c.l.bf16 %v890_v15  ;;  %v925_v27 = vmov 0  }
  0xb3   :  { %v474_v50 = vadd.f32 %v473_v25, %v445_v43  ;;  %894 = vset.pattern.permute.xlu0 %v925_v27  ;;  %v540_v38 = vsel %vm539_vm6, %v531_v24, 0.0 }
  0xb4   :  { %568 = vperm.xlu0 %894, %v565_v23  }
  0xb5   :  { %v500_v59 = vmul.f32 0.2, %v474_v50  ;;  %vm492_vm0 = vcmp.gt.f32.partialorder %v474_v50, 0.0 }
  0xb7   :  { %v508_v6 = vsel %vm492_vm0, %v474_v50, %v500_v59 }
  0xb8   :  { %v447_v29 = vpop.f32.mrf.mxu2  ;;  %v391_v31 = vpop.f32.mrf.mxu0  ;;  %v532_v16 = vmul.f32 %v876_v5, %v508_v6 }
  0xb9   :  { %v476_v30 = vpop.f32.mrf.mxu3  ;;  %v420_v32 = vpop.f32.mrf.mxu1  ;;  %v448_v47 = vadd.f32 %v447_v29, %v419_v40 }
  0xba   :  { %v421_v48 = vadd.f32 %v420_v32, %v391_v31  ;;  %v541_v31 = vsel %vm539_vm6, %v532_v16, 0.0 }
  0xbb   :  { %v477_v53 = vadd.f32 %v476_v30, %v448_v47  ;;  %v891_v30 = vld [vmem:[%s1190_s2 + $0x18] sm:$0xff]   ;;  %s926_s2 = smov [#allocation3]  }
  0xbc   :  { %v888_v56 = vunpack.c.h.bf16 %v891_v30  ;;  %s621_s28 = sshll.u32 %s926_s2, 4  ;;  %s622_s28 = int_to_ptr.vmem [resolvable:$true] %s621_s28 }
  0xbd   :  { %v501_v2 = vmul.f32 0.2, %v477_v53  ;;  %vm493_vm2 = vcmp.gt.f32.partialorder %v477_v53, 0.0 }
  0xbf   :  { %v509_v13 = vsel %vm493_vm2, %v477_v53, %v501_v2 }
  0xc0   :  { %v449_v33 = vpop.f32.mrf.mxu2  ;;  %v394_v35 = vpop.f32.mrf.mxu0  ;;  %v533_v25 = vmul.f32 %v879_v11, %v509_v13 }
  0xc1   :  { %v478_v34 = vpop.f32.mrf.mxu3  ;;  %v423_v36 = vpop.f32.mrf.mxu1  ;;  %v450_v51 = vadd.f32 %v449_v33, %v421_v48  ;;  %v884_v33 = vunpack.c.h.bf16 %v890_v15 }
  0xc2   :  { %v424_v49 = vadd.f32 %v423_v36, %v394_v35  ;;  %v543_v39 = vsel %vm539_vm6, %v533_v25, 0.0 }
  0xc3   :  { %v479_v60 = vadd.f32 %v478_v34, %v450_v51 }
  0xc5   :  { %v502_v7 = vmul.f32 0.2, %v479_v60  ;;  %vm494_vm3 = vcmp.gt.f32.partialorder %v479_v60, 0.0 }
  0xc7   :  { %v510_v20 = vsel %vm494_vm3, %v479_v60, %v502_v7 }
  0xc8   :  { %v452_v41 = vpop.f32.mrf.mxu2  ;;  %v396_v44 = vpop.f32.mrf.mxu0  ;;  %v534_v32 = vmul.f32 %v880_v17, %v510_v20 }
  0xc9   :  { %v481_v42 = vpop.f32.mrf.mxu3  ;;  %v425_v45 = vpop.f32.mrf.mxu1  ;;  %v453_v54 = vadd.f32 %v452_v41, %v424_v49  ;;  %v887_v41 = vunpack.c.l.bf16 %v891_v30 }
  0xca   :  { %v426_v55 = vadd.f32 %v425_v45, %v396_v44  ;;  %v545_v45 = vsel %vm539_vm6, %v534_v32, 0.0 }
  0xcb   :  { %v482_v4 = vadd.f32 %v481_v42, %v453_v54  ;;  %v542_v42 = vadd.f32 %v541_v31, %v540_v38 }
  0xcd   :  { %v503_v14 = vmul.f32 0.2, %v482_v4  ;;  %vm495_vm4 = vcmp.gt.f32.partialorder %v482_v4, 0.0  ;;  %v544_v48 = vadd.f32 %v543_v39, %v542_v42 }
  0xcf   :  { %v511_v28 = vsel %vm495_vm4, %v482_v4, %v503_v14  ;;  %v546_v53 = vadd.f32 %v545_v45, %v544_v48 }
  0xd0   :  { %v454_v57 = vpop.f32.mrf.mxu2  ;;  %v399_v62 = vpop.f32.mrf.mxu0  ;;  %v535_v40 = vmul.f32 %v883_v26, %v511_v28 }
  0xd1   :  { %v483_v58 = vpop.f32.mrf.mxu3  ;;  %v455_v61 = vadd.f32 %v454_v57, %v426_v55  ;;  %v428_v63 = vpop.f32.mrf.mxu1 }
  0xd2   :  { %v429_v9 = vadd.f32 %v428_v63, %v399_v62  ;;  %v547_v50 = vsel %vm539_vm6, %v535_v40, 0.0 }
  0xd3   :  { %v484_v8 = vadd.f32 %v483_v58, %v455_v61  ;;  %v548_v57 = vadd.f32 %v547_v50, %v546_v53 }
  0xd5   :  { %v504_v21 = vmul.f32 0.2, %v484_v8  ;;  %vm496_vm5 = vcmp.gt.f32.partialorder %v484_v8, 0.0 }
  0xd7   :  { %v512_v36 = vsel %vm496_vm5, %v484_v8, %v504_v21 }
  0xd8   :  { %v457_v18 = vpop.f32.mrf.mxu2  ;;  %v401_v34 = vpop.f32.mrf.mxu0  ;;  %v536_v46 = vmul.f32 %v884_v33, %v512_v36 }
  0xd9   :  { %v486_v19 = vpop.f32.mrf.mxu3  ;;  %v458_v22 = vadd.f32 %v457_v18, %v429_v9  ;;  %v430_v35 = vpop.f32.mrf.mxu1 }
  0xda   :  { %v431_v44 = vadd.f32 %v430_v35, %v401_v34  ;;  %v549_v55 = vsel %vm539_vm6, %v536_v46, 0.0 }
  0xdb   :  { %v487_v29 = vadd.f32 %v486_v19, %v458_v22  ;;  %v550_v60 = vadd.f32 %v549_v55, %v548_v57 }
  0xdd   :  { %vm497_vm7 = vcmp.gt.f32.partialorder %v487_v29, 0.0  ;;  %v505_v37 = vmul.f32 0.2, %v487_v29 }
  0xdf   :  { %v513_v43 = vsel %vm497_vm7, %v487_v29, %v505_v37 }
  0xe0   :  { %v459_v47 = vpop.f32.mrf.mxu2  ;;  %v537_v51 = vmul.f32 %v887_v41, %v513_v43 }
  0xe1   :  { %v460_v49 = vadd.f32 %v459_v47, %v431_v44  ;;  %v488_v52 = vpop.f32.mrf.mxu3 }
  0xe2   :  { %v551_v59 = vsel %vm539_vm6, %v537_v51, 0.0 }
  0xe3   :  { %v489_v54 = vadd.f32 %v488_v52, %v460_v49  ;;  %v552_v63 = vadd.f32 %v551_v59, %v550_v60 }
  0xe5   :  { %vm498_vm8 = vcmp.gt.f32.partialorder %v489_v54, 0.0  ;;  %v506_v58 = vmul.f32 0.2, %v489_v54 }
  0xe7   :  { %v514_v61 = vsel %vm498_vm8, %v489_v54, %v506_v58 }
  0xe8   :  { %v538_v62 = vmul.f32 %v888_v56, %v514_v61 }
  0xea   :  { %v553_v0 = vsel %vm539_vm6, %v538_v62, 0.0 }
  0xeb   :  { %v554_v1 = vadd.f32 %v553_v0, %v552_v63 }
  0xed   :  { %v555_v2 = vrot.slane %v554_v1, 4 }
  0xef   :  { %v556_v3 = vadd.f32 %v555_v2, %v554_v1 }
  0xf1   :  { %v557_v4 = vrot.slane %v556_v3, 2 }
  0xf3   :  { %v558_v5 = vadd.f32 %v557_v4, %v556_v3 }
  0xf5   :  { %v559_v6 = vrot.slane %v558_v5, 1 }
  0xf7   :  { %v560_v7 = vadd.f32 %v559_v6, %v558_v5 }
  0xf9   :  { %824 = vmatmul.msk.f32.vlgmr.msrb.gmra.mxu0 %vm539_vm6, %v560_v7 }
 0x126   :  { %v569_v8 = vpop.permute.xlu0 %568 }
 0x127   :  { %v571_v9 = vperm.slane %v569_v8, 0 }
 0x176   :  { %v592_v10 = vpop.f32.mrf.mxu0 }
 0x177   :  { %v593_v11 = vadd.f32 %v592_v10, %v571_v9 }
 0x179   :  { %v595_v12 = vsub.f32 0.0, %v593_v11 }
 0x17b   :  { %v596_v13 = vmul.f32 1.442695, %v595_v12 }
 0x17d   :  { %895 = vpow2.f32 %v596_v13 }
 0x183   :  { %v896_v14 = vpop.eup %895 }
 0x184   :  { %v598_v15 = vadd.f32 1.0, %v896_v14 }
 0x186   :  { %897 = vrcp.f32 %v598_v15  ;;  %v610_v19 = vand.u32 2147483648, %v598_v15  ;;  %v608_v21 = vand.u32 2147483647, %v598_v15  ;;  %vm604_vm10 = vweird.f32 %v598_v15 }
 0x188   :  { %v611_v23 = vor.u32 1.1754944e-38, %v610_v19  ;;  %vm609_vm13 = vcmp.eq.f32.partialorder %v608_v21, 8.507059e+37 }
 0x18c   :  { %v898_v16 = vpop.eup %897 }
 0x18d   :  { %v600_v17 = vmul.f32 %v898_v16, %v598_v15  ;;  %vm605_vm9 = vweird.f32 %v898_v16 }
 0x18e   :  { %vm606_vm11 = vmor %vm604_vm10, %vm605_vm9 }
 0x18f   :  { %v601_v18 = vsub.f32 1.0, %v600_v17 }
 0x191   :  { %v602_v20 = vmul.f32 %v898_v16, %v601_v18 }
 0x193   :  { %v603_v22 = vadd.f32 %v898_v16, %v602_v20 }
 0x195   :  { %v607_v24 = vsel %vm606_vm11, %v898_v16, %v603_v22 }
 0x196   :  { %v612_v25 = vsel %vm609_vm13, %v611_v23, %v607_v24 }
 0x197   :  { %615 = vst.msk [vmem:[#allocation3] sm:$0x1] %vm614_vm12, %v612_v25 }
 0x198   :  { %626 = dma.vmem_to_hbm [thread:$0]  %s622_s28, 16, %s624_s6, [#allocation4]  }
 0x199   :  { %923 = dma.done.wait [#allocation4], 16  }
 0x19a   :  { %924 = vsyncadd [#allocation4], 4294967280 }
 0x19b   :  { %631 = vsyncpa [#allocation4], 1 }

</bundles_post_ra>
